<compile_context>
chip_gen: v6e
topology: v6e:2x2x1
jax: 0.10.0
libtpu: 0.0.40
codegen_flags: <defaults>
</compile_context>

<pallas_src>
import functools
from math import sqrt

import jax
import jax.numpy as jnp
from jax.experimental import pallas as pl
from jax.experimental.pallas import tpu as pltpu


# ----------------------------- Pallas kernel -----------------------------

def _node_gat_kernel(n_ref, ssrc_ref, sdst_ref, adj_ref, wqk_ref,
                     out_ref, alpha_scr, h_scr, *,
                     num_domains, tile_dst, target, embed):
    """One dst-node tile of the NodeGAT forward.

    n_ref    : (Nn, Dp)        bf16  node features (lane padded), resident
    ssrc_ref : (nd, Nn)        f32   hoisted src edge scores  s_src[d, s]
    sdst_ref : (tile, nd)      f32   hoisted dst edge scores  s_dst[t, d]
    adj_ref  : (nd, tile, Nn)  int8  adjacency tile, adj[d, dst, src]
    wqk_ref  : (Dp, Dp)        bf16  folded Wq_t @ Wk_t^T (zero padded)
    out_ref  : (tile, Dp)      f32   output Np tile (lane-dense store)
    alpha_scr: (nd*tile, Nn)   bf16  VMEM scratch, all per-domain alphas
    h_scr    : (nd*tile, Dp)   f32   VMEM scratch, all per-domain reduced H
    """
    nd = num_domains
    slope = jnp.float32(0.01)          # F.leaky_relu default negative_slope
    neg = jnp.float32(-1e30)

    s_src = ssrc_ref[...]              # (nd, Nn)  grid-invariant, precomputed
    s_dst = sdst_ref[...]              # (tile, nd) this tile's dst scores

    # ---- per-domain masked softmax over incoming edges -> alpha ----------
    for d in range(nd):
        logits = s_dst[:, d:d + 1] + s_src[d:d + 1, :]            # (tile, Nn)
        logits = jnp.where(logits >= 0, logits, slope * logits)   # leaky_relu
        lm = jnp.where(adj_ref[d] != 0, logits, neg)              # int8 mask
        mrow = jnp.max(lm, axis=1, keepdims=True)
        # masked entries underflow to exactly 0 after the exp (requires >= 1
        # in-edge per dst row in EVERY domain, which the self-loops guarantee,
        # see the check in __main__), so the reference's `* mask` is dropped.
        p = jnp.exp(lm - mrow)
        denom = jnp.sum(p, axis=1, keepdims=True)
        alpha = p * pl.reciprocal(denom, approx=True)             # EUP slot
        alpha_scr[d * tile_dst:(d + 1) * tile_dst, :] = alpha.astype(jnp.bfloat16)

    # ---- batched reduce: all domains in ONE MXU call ----------------------
    h_scr[...] = jnp.dot(alpha_scr[...], n_ref[...],
                         preferred_element_type=jnp.float32)      # (nd*tile, Dp)

    # ---- cross-domain attention combine -----------------------------------
    h_t = h_scr[target * tile_dst:(target + 1) * tile_dst, :]     # (tile, Dp)
    # Wq/Wk folded:  qk = (h_t @ Wq_t) @ Wk_t^T == h_t @ (Wq_t @ Wk_t^T)
    qk = jnp.dot(h_t.astype(jnp.bfloat16), wqk_ref[...],
                 preferred_element_type=jnp.float32)              # (tile, Dp)
    inv_sqrt_d = jnp.float32(1.0 / sqrt(embed))

    # e_d = sum(q * Wk(H_d)) == rowsum(H_d * qk): elementwise mul + lane reduce.
    e = []
    for d in range(nd):
        h_d = h_scr[d * tile_dst:(d + 1) * tile_dst, :]
        e.append(jnp.sum(h_d * qk, axis=1, keepdims=True) * inv_sqrt_d)
    m = e[0]
    for d in range(1, nd):
        m = jnp.maximum(m, e[d])
    exps = [jnp.exp(ei - m) for ei in e]
    den = exps[0]
    for d in range(1, nd):
        den = den + exps[d]
    inv_den = pl.reciprocal(den, approx=True)                     # EUP slot

    acc = (exps[0] * inv_den) * h_scr[0:tile_dst, :]
    for d in range(1, nd):
        acc = acc + (exps[d] * inv_den) * h_scr[d * tile_dst:(d + 1) * tile_dst, :]
    # TODO(synk): the reference layer computes Wv(value) but never uses it; omitted.
    out_ref[...] = acc.astype(out_ref.dtype)                      # lane-dense store


# ------------------------------- wrapper ---------------------------------

def node_gat_layer(N, W1_t, a_src, a_dst, adj, Wq_t, Wk_t, target_idx,
                   *, tile_dst=64, lane_pad=128):
    """N:(Nn,D) f32, W1_t:(nd,D,D), a_src/a_dst:(nd,1,D), adj:(nd,Nn,Nn) int-like,
    Wq_t/Wk_t:(D,D). Returns the lane-padded Np:(Nn, lane_pad) f32 (columns
    [D:] are zero); slice to [:, :D] only if the consumer needs it."""
    Nn, D = N.shape
    nd = W1_t.shape[0]
    Dp = lane_pad
    assert D <= Dp and Nn % tile_dst == 0 and tile_dst % 32 == 0

    hi = jax.lax.Precision.HIGHEST

    # -------- weight-only + grid-invariant preprocessing ------------------
    # fold fc2 through fc1:  s = fc1(x) . a  ==  x . (W1^T a)
    u_src = jnp.einsum("dio,do->di", W1_t, a_src[:, 0, :], precision=hi)  # (nd, D)
    u_dst = jnp.einsum("dio,do->di", W1_t, a_dst[:, 0, :], precision=hi)  # (nd, D)
    # hoisted edge scores (previously recomputed every grid step in-kernel)
    s_src = jnp.dot(u_src, N.T, precision=hi).astype(jnp.float32)        # (nd, Nn)
    s_dst = jnp.dot(N, u_dst.T, precision=hi).astype(jnp.float32)        # (Nn, nd)
    # fold Wq and Wk:  qk = h_t @ (Wq_t @ Wk_t^T)
    Wqk = jnp.dot(Wq_t, Wk_t.T, precision=hi)                            # (D, D)

    def pad_last(x):
        pad = [(0, 0)] * (x.ndim - 1) + [(0, Dp - x.shape[-1])]
        return jnp.pad(x, pad)

    def pad_square(x):
        return jnp.pad(x, ((0, Dp - x.shape[0]), (0, Dp - x.shape[1])))

    N_bf = pad_last(N).astype(jnp.bfloat16)                  # (Nn, Dp) bf16
    Wqk_p = pad_square(Wqk).astype(jnp.bfloat16)             # (Dp, Dp) bf16
    adj_i8 = adj.astype(jnp.int8)                            # 4x less HBM/VMEM

    kernel = functools.partial(_node_gat_kernel, num_domains=nd,
                               tile_dst=tile_dst, target=int(target_idx),
                               embed=D)
    out = pl.pallas_call(
        kernel,
        out_shape=jax.ShapeDtypeStruct((Nn, Dp), jnp.float32),
        grid=(Nn // tile_dst,),
        in_specs=[
            # grid-invariant blocks: single-buffered (no point double-buffering)
            pl.BlockSpec((Nn, Dp), lambda i: (0, 0),
                         pipeline_mode=pl.Buffered(1)),                 # N (bf16)
            pl.BlockSpec((nd, Nn), lambda i: (0, 0),
                         pipeline_mode=pl.Buffered(1)),                 # s_src
            pl.BlockSpec((tile_dst, nd), lambda i: (i, 0)),             # s_dst tile
            pl.BlockSpec((nd, tile_dst, Nn), lambda i: (0, i, 0)),      # adj tile
            pl.BlockSpec((Dp, Dp), lambda i: (0, 0),
                         pipeline_mode=pl.Buffered(1)),                 # Wqk
        ],
        out_specs=pl.BlockSpec((tile_dst, Dp), lambda i: (i, 0)),
        scratch_shapes=[
            pltpu.VMEM((nd * tile_dst, Nn), jnp.bfloat16),   # all-domain alpha
            pltpu.VMEM((nd * tile_dst, Dp), jnp.float32),    # all-domain H
        ],
        compiler_params=pltpu.CompilerParams(
            # dst tiles are fully independent -> megacore / 2-TC can split them.
            dimension_semantics=("parallel",),
            # sized against v7x's 32 MiB scoped VMEM; on v5e/v6e (128 MiB VMEM)
            # raise this to 64-100 MiB and bump tile_dst to 128-256.
            vmem_limit_bytes=32 * 1024 * 1024),
    )(N_bf, s_src, s_dst, adj_i8, Wqk_p)
    return out   # (Nn, Dp) lane-padded; columns [D:] are exactly zero


# ------------------------- pure-JAX reference -----------------------------

def node_gat_ref(N, W1_t, a_src, a_dst, adj, Wq_t, Wk_t, target_idx):
    Nn, D = N.shape
    nd = W1_t.shape[0]
    adj_f = adj.astype(jnp.float32)
    H = []
    for d in range(nd):
        h = N @ W1_t[d]
        s_src = h @ a_src[d, 0]                       # (Nn,)
        s_dst = h @ a_dst[d, 0]                       # (Nn,)
        logits = s_dst[:, None] + s_src[None, :]      # (dst, src)
        logits = jnp.where(logits >= 0, logits, 0.01 * logits)
        mask = adj_f[d]
        lm = jnp.where(mask > 0, logits, -1e30)
        mrow = jnp.max(lm, axis=1, keepdims=True)
        p = jnp.exp(lm - mrow) * mask
        alpha = p / jnp.maximum(jnp.sum(p, axis=1, keepdims=True), 1e-30)
        H.append(alpha @ N)
    q = H[target_idx] @ Wq_t
    e = jnp.stack([jnp.sum(q * (H[d] @ Wk_t), axis=1) for d in range(nd)],
                  axis=1) / sqrt(D)
    a = jax.nn.softmax(e, axis=1)
    Np = jnp.zeros((Nn, D), jnp.float32)
    for d in range(nd):
        Np = Np + a[:, d][:, None] * H[d]
    return Np


# --------------------------------- main -----------------------------------

if __name__ == "__main__":
    domains = ["CDs_and_Vinyl", "Digital_Music", "Musical_Instruments"]
    num_domains = len(domains)
    num_nodes = 128            # 2 dst tiles of 64 -> exercises the real grid
    embed = 32
    target_domain = "CDs_and_Vinyl"
    target_idx = domains.index(target_domain)

    key = jax.random.PRNGKey(0)
    keys = jax.random.split(key, 8)

    # node features
    N = jax.random.normal(keys[0], (num_nodes, embed), dtype=jnp.float32)

    # nn.Linear-style init (uniform(-1/sqrt(fan_in), 1/sqrt(fan_in))), bias=False
    b1 = 1.0 / sqrt(embed)
    b2 = 1.0 / sqrt(2 * embed)
    fc1_w = jax.random.uniform(keys[1], (num_domains, embed, embed),
                               minval=-b1, maxval=b1, dtype=jnp.float32)
    fc2_w = jax.random.uniform(keys[2], (num_domains, 1, 2 * embed),
                               minval=-b2, maxval=b2, dtype=jnp.float32)
    Wq_w = jax.random.uniform(keys[3], (embed, embed), minval=-b1, maxval=b1,
                              dtype=jnp.float32)
    Wk_w = jax.random.uniform(keys[4], (embed, embed), minval=-b1, maxval=b1,
                              dtype=jnp.float32)

    # pre-transpose so x @ W == Linear(x) with W = weight.T
    W1_t = jnp.transpose(fc1_w, (0, 2, 1))
    a_src = fc2_w[:, :, :embed]           # (nd, 1, D)
    a_dst = fc2_w[:, :, embed:]           # (nd, 1, D)
    Wq_t = Wq_w.T
    Wk_t = Wk_w.T

    # per-domain adjacency adj[d, dst, src] as int8 (0/1); self-loops ensure
    # every dst node has at least one in-edge in every domain (required by the
    # kernel's underflow-based masked softmax).
    adj = (jax.random.uniform(keys[5], (num_domains, num_nodes, num_nodes))
           < 0.25).astype(jnp.int8)
    adj = jnp.maximum(adj, jnp.eye(num_nodes, dtype=jnp.int8)[None])
    assert bool(jnp.all(jnp.sum(adj != 0, axis=2) > 0)), \
        "every dst node needs >= 1 in-edge per domain"

    out_padded = node_gat_layer(N, W1_t, a_src, a_dst, adj, Wq_t, Wk_t,
                                target_idx, tile_dst=64)
    out_padded = jax.block_until_ready(out_padded)
    # Narrow slice is done only here, for the reference comparison; the layer
    # itself keeps the lane-padded layout to avoid an extra HBM round trip.
    out = out_padded[:, :embed]

    ref = node_gat_ref(N, W1_t, a_src, a_dst, adj, Wq_t, Wk_t, target_idx)
    assert out.shape == (num_nodes, embed)
    # bf16 MXU operands + approx reciprocals vs the all-f32 reference.
    assert jnp.allclose(out, ref, atol=2e-2, rtol=2e-2), (
        "mismatch vs reference: max abs err = "
        f"{float(jnp.max(jnp.abs(out - ref)))}")

    print("KERNEL_OK")
</pallas_src>

<mosaic_0001>
module attributes {stable_mosaic.version = 11 : i64} {
  func.func @_node_gat_kernel(%arg0: i32, %arg1: memref<128x128xbf16, #tpu.memory_space<vmem>>, %arg2: memref<3x128xf32, #tpu.memory_space<vmem>>, %arg3: memref<64x3xf32, #tpu.memory_space<vmem>>, %arg4: memref<3x64x128xi8, #tpu.memory_space<vmem>>, %arg5: memref<128x128xbf16, #tpu.memory_space<vmem>>, %arg6: memref<64x128xf32, #tpu.memory_space<vmem>>, %arg7: memref<192x128xbf16, #tpu.memory_space<vmem>>, %arg8: memref<192x128xf32, #tpu.memory_space<vmem>>) attributes {dimension_semantics = [#tpu.dimension_semantics<parallel>], iteration_bounds = array<i64: 2>, scalar_prefetch = 0 : i64, scratch_operands = 2 : i64, tpu.core_type = #tpu.core_type<tc>, window_params = [{pipeline_mode = #tpu.pipeline_mode<synchronous>, transform_indices = @transform_0, window_bounds = array<i64: 128, 128>}, {pipeline_mode = #tpu.pipeline_mode<synchronous>, transform_indices = @transform_1, window_bounds = array<i64: 3, 128>}, {transform_indices = @transform_2, window_bounds = array<i64: 64, 3>}, {transform_indices = @transform_3, window_bounds = array<i64: 3, 64, 128>}, {pipeline_mode = #tpu.pipeline_mode<synchronous>, transform_indices = @transform_4, window_bounds = array<i64: 128, 128>}, {transform_indices = @transform_5, window_bounds = array<i64: 64, 128>}]} {
    %c0 = arith.constant 0 : index
    %c0_0 = arith.constant 0 : index
    %0 = vector.load %arg2[%c0, %c0_0] : memref<3x128xf32, #tpu.memory_space<vmem>>, vector<3x128xf32>
    %c0_1 = arith.constant 0 : index
    %c0_2 = arith.constant 0 : index
    %1 = vector.load %arg3[%c0_1, %c0_2] : memref<64x3xf32, #tpu.memory_space<vmem>>, vector<64x3xf32>
    %2 = vector.extract_strided_slice %1 {offsets = [0, 0], sizes = [64, 1], strides = [1, 1]} : vector<64x3xf32> to vector<64x1xf32>
    %3 = vector.extract_strided_slice %0 {offsets = [0, 0], sizes = [1, 128], strides = [1, 1]} : vector<3x128xf32> to vector<1x128xf32>
    %4 = vector.broadcast %2 : vector<64x1xf32> to vector<64x128xf32>
    %5 = vector.broadcast %3 : vector<1x128xf32> to vector<64x128xf32>
    %6 = arith.addf %4, %5 : vector<64x128xf32>
    %cst = arith.constant 0.000000e+00 : f32
    %7 = vector.broadcast %cst : f32 to vector<64x128xf32>
    %8 = arith.cmpf oge, %6, %7 : vector<64x128xf32>
    %cst_3 = arith.constant 0.00999999977 : f32
    %9 = vector.broadcast %cst_3 : f32 to vector<64x128xf32>
    %10 = arith.mulf %9, %6 : vector<64x128xf32>
    %11 = arith.select %8, %6, %10 : vector<64x128xi1>, vector<64x128xf32>
    %c0_4 = arith.constant 0 : index
    %c0_5 = arith.constant 0 : index
    %c0_6 = arith.constant 0 : index
    %12 = vector.load %arg4[%c0_4, %c0_5, %c0_6] : memref<3x64x128xi8, #tpu.memory_space<vmem>>, vector<1x64x128xi8>
    %13 = vector.shape_cast %12 : vector<1x64x128xi8> to vector<64x128xi8>
    %c0_i8 = arith.constant 0 : i8
    %14 = vector.broadcast %c0_i8 : i8 to vector<64x128xi8>
    %15 = arith.cmpi ne, %13, %14 : vector<64x128xi8>
    %cst_7 = arith.constant -1.000000e+30 : f32
    %16 = vector.broadcast %cst_7 : f32 to vector<64x128xf32>
    %17 = arith.select %15, %11, %16 : vector<64x128xi1>, vector<64x128xf32>
    %cst_8 = arith.constant dense<0xFF800000> : vector<64xf32>
    %18 = vector.multi_reduction <maximumf>, %17, %cst_8 [1] : vector<64x128xf32> to vector<64xf32>
    %19 = vector.shape_cast %18 : vector<64xf32> to vector<64x1xf32>
    %20 = vector.broadcast %19 : vector<64x1xf32> to vector<64x128xf32>
    %21 = arith.subf %17, %20 : vector<64x128xf32>
    %22 = math.exp %21 : vector<64x128xf32>
    %cst_9 = arith.constant dense<0.000000e+00> : vector<64xf32>
    %23 = vector.multi_reduction <add>, %22, %cst_9 [1] : vector<64x128xf32> to vector<64xf32>
    %24 = vector.shape_cast %23 : vector<64xf32> to vector<64x1xf32>
    %25 = tpu.reciprocal %24 {approx = true} : vector<64x1xf32> -> vector<64x1xf32>
    %26 = vector.broadcast %25 : vector<64x1xf32> to vector<64x128xf32>
    %27 = arith.mulf %22, %26 : vector<64x128xf32>
    %28 = arith.truncf %27 : vector<64x128xf32> to vector<64x128xbf16>
    %c0_10 = arith.constant 0 : index
    %c0_11 = arith.constant 0 : index
    %29 = vector.load %arg7[%c0_10, %c0_11] : memref<192x128xbf16, #tpu.memory_space<vmem>>, vector<64x128xbf16>
    tpu.vector_store %arg7[%c0_10, %c0_11], %28 {strides = array<i32>} : memref<192x128xbf16, #tpu.memory_space<vmem>>, vector<64x128xbf16>,
    %30 = vector.extract_strided_slice %1 {offsets = [0, 1], sizes = [64, 1], strides = [1, 1]} : vector<64x3xf32> to vector<64x1xf32>
    %31 = vector.extract_strided_slice %0 {offsets = [1, 0], sizes = [1, 128], strides = [1, 1]} : vector<3x128xf32> to vector<1x128xf32>
    %32 = vector.broadcast %30 : vector<64x1xf32> to vector<64x128xf32>
    %33 = vector.broadcast %31 : vector<1x128xf32> to vector<64x128xf32>
    %34 = arith.addf %32, %33 : vector<64x128xf32>
    %cst_12 = arith.constant 0.000000e+00 : f32
    %35 = vector.broadcast %cst_12 : f32 to vector<64x128xf32>
    %36 = arith.cmpf oge, %34, %35 : vector<64x128xf32>
    %cst_13 = arith.constant 0.00999999977 : f32
    %37 = vector.broadcast %cst_13 : f32 to vector<64x128xf32>
    %38 = arith.mulf %37, %34 : vector<64x128xf32>
    %39 = arith.select %36, %34, %38 : vector<64x128xi1>, vector<64x128xf32>
    %c1 = arith.constant 1 : index
    %c0_14 = arith.constant 0 : index
    %c0_15 = arith.constant 0 : index
    %40 = vector.load %arg4[%c1, %c0_14, %c0_15] : memref<3x64x128xi8, #tpu.memory_space<vmem>>, vector<1x64x128xi8>
    %41 = vector.shape_cast %40 : vector<1x64x128xi8> to vector<64x128xi8>
    %c0_i8_16 = arith.constant 0 : i8
    %42 = vector.broadcast %c0_i8_16 : i8 to vector<64x128xi8>
    %43 = arith.cmpi ne, %41, %42 : vector<64x128xi8>
    %cst_17 = arith.constant -1.000000e+30 : f32
    %44 = vector.broadcast %cst_17 : f32 to vector<64x128xf32>
    %45 = arith.select %43, %39, %44 : vector<64x128xi1>, vector<64x128xf32>
    %cst_18 = arith.constant dense<0xFF800000> : vector<64xf32>
    %46 = vector.multi_reduction <maximumf>, %45, %cst_18 [1] : vector<64x128xf32> to vector<64xf32>
    %47 = vector.shape_cast %46 : vector<64xf32> to vector<64x1xf32>
    %48 = vector.broadcast %47 : vector<64x1xf32> to vector<64x128xf32>
    %49 = arith.subf %45, %48 : vector<64x128xf32>
    %50 = math.exp %49 : vector<64x128xf32>
    %cst_19 = arith.constant dense<0.000000e+00> : vector<64xf32>
    %51 = vector.multi_reduction <add>, %50, %cst_19 [1] : vector<64x128xf32> to vector<64xf32>
    %52 = vector.shape_cast %51 : vector<64xf32> to vector<64x1xf32>
    %53 = tpu.reciprocal %52 {approx = true} : vector<64x1xf32> -> vector<64x1xf32>
    %54 = vector.broadcast %53 : vector<64x1xf32> to vector<64x128xf32>
    %55 = arith.mulf %50, %54 : vector<64x128xf32>
    %56 = arith.truncf %55 : vector<64x128xf32> to vector<64x128xbf16>
    %c64 = arith.constant 64 : index
    %c0_20 = arith.constant 0 : index
    %57 = vector.load %arg7[%c64, %c0_20] : memref<192x128xbf16, #tpu.memory_space<vmem>>, vector<64x128xbf16>
    tpu.vector_store %arg7[%c64, %c0_20], %56 {strides = array<i32>} : memref<192x128xbf16, #tpu.memory_space<vmem>>, vector<64x128xbf16>,
    %58 = vector.extract_strided_slice %1 {offsets = [0, 2], sizes = [64, 1], strides = [1, 1]} : vector<64x3xf32> to vector<64x1xf32>
    %59 = vector.extract_strided_slice %0 {offsets = [2, 0], sizes = [1, 128], strides = [1, 1]} : vector<3x128xf32> to vector<1x128xf32>
    %60 = vector.broadcast %58 : vector<64x1xf32> to vector<64x128xf32>
    %61 = vector.broadcast %59 : vector<1x128xf32> to vector<64x128xf32>
    %62 = arith.addf %60, %61 : vector<64x128xf32>
    %cst_21 = arith.constant 0.000000e+00 : f32
    %63 = vector.broadcast %cst_21 : f32 to vector<64x128xf32>
    %64 = arith.cmpf oge, %62, %63 : vector<64x128xf32>
    %cst_22 = arith.constant 0.00999999977 : f32
    %65 = vector.broadcast %cst_22 : f32 to vector<64x128xf32>
    %66 = arith.mulf %65, %62 : vector<64x128xf32>
    %67 = arith.select %64, %62, %66 : vector<64x128xi1>, vector<64x128xf32>
    %c2 = arith.constant 2 : index
    %c0_23 = arith.constant 0 : index
    %c0_24 = arith.constant 0 : index
    %68 = vector.load %arg4[%c2, %c0_23, %c0_24] : memref<3x64x128xi8, #tpu.memory_space<vmem>>, vector<1x64x128xi8>
    %69 = vector.shape_cast %68 : vector<1x64x128xi8> to vector<64x128xi8>
    %c0_i8_25 = arith.constant 0 : i8
    %70 = vector.broadcast %c0_i8_25 : i8 to vector<64x128xi8>
    %71 = arith.cmpi ne, %69, %70 : vector<64x128xi8>
    %cst_26 = arith.constant -1.000000e+30 : f32
    %72 = vector.broadcast %cst_26 : f32 to vector<64x128xf32>
    %73 = arith.select %71, %67, %72 : vector<64x128xi1>, vector<64x128xf32>
    %cst_27 = arith.constant dense<0xFF800000> : vector<64xf32>
    %74 = vector.multi_reduction <maximumf>, %73, %cst_27 [1] : vector<64x128xf32> to vector<64xf32>
    %75 = vector.shape_cast %74 : vector<64xf32> to vector<64x1xf32>
    %76 = vector.broadcast %75 : vector<64x1xf32> to vector<64x128xf32>
    %77 = arith.subf %73, %76 : vector<64x128xf32>
    %78 = math.exp %77 : vector<64x128xf32>
    %cst_28 = arith.constant dense<0.000000e+00> : vector<64xf32>
    %79 = vector.multi_reduction <add>, %78, %cst_28 [1] : vector<64x128xf32> to vector<64xf32>
    %80 = vector.shape_cast %79 : vector<64xf32> to vector<64x1xf32>
    %81 = tpu.reciprocal %80 {approx = true} : vector<64x1xf32> -> vector<64x1xf32>
    %82 = vector.broadcast %81 : vector<64x1xf32> to vector<64x128xf32>
    %83 = arith.mulf %78, %82 : vector<64x128xf32>
    %84 = arith.truncf %83 : vector<64x128xf32> to vector<64x128xbf16>
    %c128 = arith.constant 128 : index
    %c0_29 = arith.constant 0 : index
    %85 = vector.load %arg7[%c128, %c0_29] : memref<192x128xbf16, #tpu.memory_space<vmem>>, vector<64x128xbf16>
    tpu.vector_store %arg7[%c128, %c0_29], %84 {strides = array<i32>} : memref<192x128xbf16, #tpu.memory_space<vmem>>, vector<64x128xbf16>,
    %c0_30 = arith.constant 0 : index
    %c0_31 = arith.constant 0 : index
    %86 = vector.load %arg7[%c0_30, %c0_31] : memref<192x128xbf16, #tpu.memory_space<vmem>>, vector<192x128xbf16>
    %c0_32 = arith.constant 0 : index
    %c0_33 = arith.constant 0 : index
    %87 = vector.load %arg1[%c0_32, %c0_33] : memref<128x128xbf16, #tpu.memory_space<vmem>>, vector<128x128xbf16>
    %cst_34 = arith.constant dense<0.000000e+00> : vector<192x128xf32>
    %88 = tpu.matmul %86, %87, %cst_34 {dimension_numbers = #tpu.dot_dimension_numbers<[1], [0], [0], [1], [0, 0, 1, 1], [], []>} : vector<192x128xbf16>, vector<128x128xbf16>, vector<192x128xf32> -> vector<192x128xf32>
    %c0_35 = arith.constant 0 : index
    %c0_36 = arith.constant 0 : index
    %89 = vector.load %arg8[%c0_35, %c0_36] : memref<192x128xf32, #tpu.memory_space<vmem>>, vector<192x128xf32>
    tpu.vector_store %arg8[%c0_35, %c0_36], %88 {strides = array<i32>} : memref<192x128xf32, #tpu.memory_space<vmem>>, vector<192x128xf32>,
    %c0_37 = arith.constant 0 : index
    %c0_38 = arith.constant 0 : index
    %90 = vector.load %arg8[%c0_37, %c0_38] : memref<192x128xf32, #tpu.memory_space<vmem>>, vector<64x128xf32>
    %91 = arith.truncf %90 : vector<64x128xf32> to vector<64x128xbf16>
    %c0_39 = arith.constant 0 : index
    %c0_40 = arith.constant 0 : index
    %92 = vector.load %arg5[%c0_39, %c0_40] : memref<128x128xbf16, #tpu.memory_space<vmem>>, vector<128x128xbf16>
    %cst_41 = arith.constant dense<0.000000e+00> : vector<64x128xf32>
    %93 = tpu.matmul %91, %92, %cst_41 {dimension_numbers = #tpu.dot_dimension_numbers<[1], [0], [0], [1], [0, 0, 1, 1], [], []>} : vector<64x128xbf16>, vector<128x128xbf16>, vector<64x128xf32> -> vector<64x128xf32>
    %c0_42 = arith.constant 0 : index
    %c0_43 = arith.constant 0 : index
    %94 = vector.load %arg8[%c0_42, %c0_43] : memref<192x128xf32, #tpu.memory_space<vmem>>, vector<64x128xf32>
    %95 = arith.mulf %94, %93 : vector<64x128xf32>
    %cst_44 = arith.constant dense<0.000000e+00> : vector<64xf32>
    %96 = vector.multi_reduction <add>, %95, %cst_44 [1] : vector<64x128xf32> to vector<64xf32>
    %97 = vector.shape_cast %96 : vector<64xf32> to vector<64x1xf32>
    %cst_45 = arith.constant 0.176776692 : f32
    %98 = vector.broadcast %cst_45 : f32 to vector<64x1xf32>
    %99 = arith.mulf %97, %98 : vector<64x1xf32>
    %c64_46 = arith.constant 64 : index
    %c0_47 = arith.constant 0 : index
    %100 = vector.load %arg8[%c64_46, %c0_47] : memref<192x128xf32, #tpu.memory_space<vmem>>, vector<64x128xf32>
    %101 = arith.mulf %100, %93 : vector<64x128xf32>
    %cst_48 = arith.constant dense<0.000000e+00> : vector<64xf32>
    %102 = vector.multi_reduction <add>, %101, %cst_48 [1] : vector<64x128xf32> to vector<64xf32>
    %103 = vector.shape_cast %102 : vector<64xf32> to vector<64x1xf32>
    %cst_49 = arith.constant 0.176776692 : f32
    %104 = vector.broadcast %cst_49 : f32 to vector<64x1xf32>
    %105 = arith.mulf %103, %104 : vector<64x1xf32>
    %c128_50 = arith.constant 128 : index
    %c0_51 = arith.constant 0 : index
    %106 = vector.load %arg8[%c128_50, %c0_51] : memref<192x128xf32, #tpu.memory_space<vmem>>, vector<64x128xf32>
    %107 = arith.mulf %106, %93 : vector<64x128xf32>
    %cst_52 = arith.constant dense<0.000000e+00> : vector<64xf32>
    %108 = vector.multi_reduction <add>, %107, %cst_52 [1] : vector<64x128xf32> to vector<64xf32>
    %109 = vector.shape_cast %108 : vector<64xf32> to vector<64x1xf32>
    %cst_53 = arith.constant 0.176776692 : f32
    %110 = vector.broadcast %cst_53 : f32 to vector<64x1xf32>
    %111 = arith.mulf %109, %110 : vector<64x1xf32>
    %112 = arith.maximumf %99, %105 : vector<64x1xf32>
    %113 = arith.maximumf %112, %111 : vector<64x1xf32>
    %114 = arith.subf %99, %113 : vector<64x1xf32>
    %115 = math.exp %114 : vector<64x1xf32>
    %116 = arith.subf %105, %113 : vector<64x1xf32>
    %117 = math.exp %116 : vector<64x1xf32>
    %118 = arith.subf %111, %113 : vector<64x1xf32>
    %119 = math.exp %118 : vector<64x1xf32>
    %120 = arith.addf %115, %117 : vector<64x1xf32>
    %121 = arith.addf %120, %119 : vector<64x1xf32>
    %122 = tpu.reciprocal %121 {approx = true} : vector<64x1xf32> -> vector<64x1xf32>
    %123 = arith.mulf %115, %122 : vector<64x1xf32>
    %c0_54 = arith.constant 0 : index
    %c0_55 = arith.constant 0 : index
    %124 = vector.load %arg8[%c0_54, %c0_55] : memref<192x128xf32, #tpu.memory_space<vmem>>, vector<64x128xf32>
    %125 = vector.broadcast %123 : vector<64x1xf32> to vector<64x128xf32>
    %126 = arith.mulf %125, %124 : vector<64x128xf32>
    %127 = arith.mulf %117, %122 : vector<64x1xf32>
    %c64_56 = arith.constant 64 : index
    %c0_57 = arith.constant 0 : index
    %128 = vector.load %arg8[%c64_56, %c0_57] : memref<192x128xf32, #tpu.memory_space<vmem>>, vector<64x128xf32>
    %129 = vector.broadcast %127 : vector<64x1xf32> to vector<64x128xf32>
    %130 = arith.mulf %129, %128 : vector<64x128xf32>
    %131 = arith.addf %126, %130 : vector<64x128xf32>
    %132 = arith.mulf %119, %122 : vector<64x1xf32>
    %c128_58 = arith.constant 128 : index
    %c0_59 = arith.constant 0 : index
    %133 = vector.load %arg8[%c128_58, %c0_59] : memref<192x128xf32, #tpu.memory_space<vmem>>, vector<64x128xf32>
    %134 = vector.broadcast %132 : vector<64x1xf32> to vector<64x128xf32>
    %135 = arith.mulf %134, %133 : vector<64x128xf32>
    %136 = arith.addf %131, %135 : vector<64x128xf32>
    %c0_60 = arith.constant 0 : index
    %c0_61 = arith.constant 0 : index
    %137 = vector.load %arg6[%c0_60, %c0_61] : memref<64x128xf32, #tpu.memory_space<vmem>>, vector<64x128xf32>
    tpu.vector_store %arg6[%c0_60, %c0_61], %136 {strides = array<i32>} : memref<64x128xf32, #tpu.memory_space<vmem>>, vector<64x128xf32>,
    return
  }
  func.func @transform_0(%arg0: i32) -> (i32, i32) {
    %c0_i32 = arith.constant 0 : i32
    %c0_i32_0 = arith.constant 0 : i32
    %c0_i32_1 = arith.constant 0 : i32
    return %c0_i32, %c0_i32_0 : i32, i32
  }
  func.func @transform_1(%arg0: i32) -> (i32, i32) {
    %c0_i32 = arith.constant 0 : i32
    %c0_i32_0 = arith.constant 0 : i32
    %c0_i32_1 = arith.constant 0 : i32
    return %c0_i32, %c0_i32_0 : i32, i32
  }
  func.func @transform_2(%arg0: i32) -> (i32, i32) {
    %c0_i32 = arith.constant 0 : i32
    %c0_i32_0 = arith.constant 0 : i32
    return %arg0, %c0_i32 : i32, i32
  }
  func.func @transform_3(%arg0: i32) -> (i32, i32, i32) {
    %c0_i32 = arith.constant 0 : i32
    %c0_i32_0 = arith.constant 0 : i32
    %c0_i32_1 = arith.constant 0 : i32
    return %c0_i32, %arg0, %c0_i32_0 : i32, i32, i32
  }
  func.func @transform_4(%arg0: i32) -> (i32, i32) {
    %c0_i32 = arith.constant 0 : i32
    %c0_i32_0 = arith.constant 0 : i32
    %c0_i32_1 = arith.constant 0 : i32
    return %c0_i32, %c0_i32_0 : i32, i32
  }
  func.func @transform_5(%arg0: i32) -> (i32, i32) {
    %c0_i32 = arith.constant 0 : i32
    %c0_i32_0 = arith.constant 0 : i32
    return %arg0, %c0_i32 : i32, i32
  }
}

</mosaic_0001>

<bundles_post_ra>
// kernel: tpu_custom_call.1
= control target key start
LH: loop header
LB: loop body
LE: loop exit
PB: predicated region body
PF: predicated region fallthrough
CT: control target
= control target key end

     0   :  { %10 = vsyncpa [#allocation5], 0  ;;  %s3438_s0 = inlined_call_operand.hbm [shape: bf16[128,128], index: 0, kind: input, shape index: {}]   ;;  %s3439_s1 = inlined_call_operand.vmem [shape: f32[3,128], index: 1, kind: input, shape index: {}]   ;;  %s3440_s2 = inlined_call_operand.vmem [shape: f32[128,3], index: 2, kind: input, shape index: {}]   ;;  %s3441_s3 = inlined_call_operand.vmem [shape: s8[3,128,128], index: 3, kind: input, shape index: {}]   ;;  %s3442_s4 = inlined_call_operand.hbm [shape: bf16[128,128], index: 4, kind: input, shape index: {}]   ;;  %s3443_s5 = inlined_call_operand.hbm [shape: f32[128,128], index: 5, kind: output, shape index: {}]  }
   0x1   :  { %11 = vsyncpa [#allocation9], 0 }
   0x2   :  { %12 = vsyncpa [#allocation6], 0 }
   0x3   :  { %14 = vsyncpa [#allocation6 + $0x1], 0  ;;  %s2663_s18 = smov 0   ;;  %s2665_s19 = smov 0  }
   0x4   :  { %s2667_s20 = smov 0   ;;  %s2669_s21 = smov 0  }
   0x5 LB: > { %s2684_s22 = sadd.s32 4294967295, %s2621_s21   ;;  %s1971_s23 = sadd.s32 4294967294, %s2621_s21   ;;  %s2621_s21 = sphi %s2669_s21, %s3506_s21   ;;  %s2617_s20 = sphi %s2667_s20, %s3505_s20   ;;  %s2613_s19 = sphi %s2665_s19, %s3504_s19   ;;  %s2609_s18 = sphi %s2663_s18, %s3503_s18  }
   0x6   : > { %s2688_s24 = sadd.s32 1, %s2621_s21   ;;  %s95_s25 = sadd.s32 1, %s2617_s20 }
   0x7   : > { %s92_s26 = ssub.s32 %s2621_s21, %s2688_s24  ;;  %p102_p0 = scmp.ne.s32.totalorder %s2617_s20, %s2613_s19 }
   0x8   : > { %p93_p1 = scmp.eq.s32.totalorder %s92_s26, 0  ;;  %p103_p2 = scmp.eq.s32.totalorder %s2621_s21, 0 }
   0x9   : > { %p153_p3 = scmp.eq.s32.totalorder %s2684_s22, 1  ;;  %p158_p4 = scmp.ne.s32.totalorder %s2613_s19, %s2609_s18 }
   0xa   : > { %s2700_s27 = scalar_select %p93_p1, %s2617_s20, %s95_s25  }
   0xb   : > { %p2702_p5 = por %p103_p2, %p102_p0  ;;  %p2706_p6 = por %p153_p3, %p102_p0 }
   0xc   : > { %p159_p7 = scmp.eq.s32.totalorder %s1971_s23, 1  ;;  %p1972_p8 = scmp.ge.s32.totalorder %s2621_s21, 1 }
   0xd   : > { %s3447_s29 = scalar_select %p2706_p6, 1, 0 }
   0xe   : > { %p166_p9 = scmp.lt.s32.totalorder %s2621_s21, 3  ;;  %p2712_p10 = por %p159_p7, %p158_p4 }
   0xf   : > { %p3444_p11 = scmp.eq.s32.totalorder %s2684_s22, 0  ;;  %s2623_s7 = smov [#allocation4]  }
  0x10   : > { %s3448_s30 = scalar_select %p2712_p10, 1, 0 }
  0x11   : > { %p2717_p12 = pnand %p1972_p8, %p166_p9  ;;  %s178_s8 = sshll.u32 %s2623_s7, 4  ;;  %s179_s8 = int_to_ptr.vmem [resolvable:$true] %s178_s8 }
  0x12   : > { %s2624_s10 = smov [#allocation8]   ;;  %s2512_s12 = scalar_lea.vmem %s179_s8, 1024 }
  0x13   : > { %p2250_p13 = pneg %p2717_p12  ;;  %s194_s11 = sshll.u32 %s2624_s10, 4  ;;  %s195_s11 = int_to_ptr.vmem [resolvable:$true] %s194_s11 }
  0x14   : > { %p2513_p2 = scmp.ne.s32.totalorder %s179_s8, %s2512_s12  ;;  %p2520_p7 = scmp.lt.s32.totalorder %s179_s8, %s179_s8 }
  0x15   : > { %p2725_p0 = pnand %p3444_p11, %p2250_p13  ;;  %p2521_p8 = scmp.lt.s32.totalorder %s2512_s12, %s2512_s12 }
  0x17   : > { %p2503_p1 = pneg %p2725_p0  ;;  %p2522_p9 = por %p2521_p8, %p2520_p7 }
  0x19   : > { %p2515_p3 = pnand %p2513_p2, %p2503_p1 }
  0x1b   : > { %p2516_p4 = pneg %p2515_p3 }
  0x1d   : > { %p2523_p13 = pnand %p2522_p9, %p2516_p4 }
  0x1f   : > { %2526 = shalt.err (!%p2523_p13)
}
  0x20   : > { %s2625_s13 = smov 64   ;;  %s2626_s14 = smov 4  }
  0x21   : > { %2253 = dma.hbm_to_vmem [thread:$0]  (!%p2725_p0), %s3438_s0, 1024, %s179_s8, [#allocation5], %s2625_s13, %s2625_s13, %s2626_s14  }
  0x22   : > { %s2538_s17 = scalar_lea.vmem %s195_s11, 1024  ;;  %p2546_p10 = scmp.lt.s32.totalorder %s195_s11, %s195_s11 }
  0x23   : > { %p2539_p11 = scmp.ne.s32.totalorder %s195_s11, %s2538_s17  ;;  %p2547_p6 = scmp.lt.s32.totalorder %s2538_s17, %s2538_s17 }
  0x25   : > { %p2541_p2 = pnand %p2539_p11, %p2503_p1  ;;  %p2548_p7 = por %p2547_p6, %p2546_p10 }
  0x27   : > { %p2542_p3 = pneg %p2541_p2 }
  0x29   : > { %p2549_p4 = pnand %p2548_p7, %p2542_p3 }
  0x2b   : > { %2552 = shalt.err (!%p2549_p4)
}
  0x2c   : > { %2256 = dma.hbm_to_vmem [thread:$0]  (!%p2725_p0), %s3442_s4, 1024, %s195_s11, [#allocation9], %s2625_s13, %s2625_s13, %s2626_s14  }
  0x2d   : > { %p1975_p8 = scmp.ge.s32.totalorder %s2621_s21, 2 }
  0x2f   : > { %204 = sbr.rel (%p1975_p8) target bundleno = 59 (0x3b), region = 28 }
  0x34   : > { %216 = sbr.rel (!%p2702_p5) target bundleno = 59 (0x3b), region = 36  ;;  %s218_s26 = sand.u32 (%p2702_p5), 1, %s2617_s20  }
  0x35   : > { %s2045_s7 = sshll.u32 (%p2702_p5), %s2621_s21, 4  ;;  %s2238_s8 = smul.u32 (%p2702_p5), 48, %s218_s26 }
  0x36   : > { %s223_s9 = scalar_lea.vmem (%p2702_p5), %s3441_s3, %s2045_s7 }
  0x37   : > { %v262_v0 = vld [vmem:[%s223_s9] sm:$0xff] (%p2702_p5)  ;;  %v264_v1 = vld [vmem:[%s223_s9 + $0x8] sm:$0xff] (%p2702_p5)  ;;  %s220_s11 = scalar_lea.vmem (%p2702_p5), [#allocation7], %s2238_s8 }
  0x38   : > { %v266_v2 = vld [vmem:[%s223_s9 + $0x20] sm:$0xff] (%p2702_p5)  ;;  %v268_v3 = vld [vmem:[%s223_s9 + $0x28] sm:$0xff] (%p2702_p5)  ;;  %263 = vst [vmem:[%s220_s11] sm:$0xff] (%p2702_p5), %v262_v0  ;;  %265 = vst [vmem:[%s220_s11 + $0x8] sm:$0xff] (%p2702_p5), %v264_v1 }
  0x39   : > { %v270_v4 = vld [vmem:[%s223_s9 + $0x40] sm:$0xff]  ;;  %v272_v5 = vld [vmem:[%s223_s9 + $0x48] sm:$0xff]  ;;  %267 = vst [vmem:[%s220_s11 + $0x10] sm:$0xff] %v266_v2  ;;  %269 = vst [vmem:[%s220_s11 + $0x18] sm:$0xff] %v268_v3 }
  0x3a   : > { %271 = vst [vmem:[%s220_s11 + $0x20] sm:$0xff] %v270_v4  ;;  %273 = vst [vmem:[%s220_s11 + $0x28] sm:$0xff] %v272_v5 }
  0x3b PF: > { %282 = sbr.rel (%p2717_p12) target bundleno = 1322 (0x52a), region = 74  ;;  %p3451_p5 = scmp.eq.s32.totalorder (!%p2717_p12), %s2684_s22, 0 }
  0x40   : > { %2596 = dma.done.wait (%p3451_p5), [#allocation5], 1024   ;;  %p3452_p6 = pmov %p3451_p5 }
  0x41   : > { %s2764_s28 = sand.u32 1, %s2613_s19   ;;  %p3453_p10 = pmov %p3451_p5 }
  0x42   : > { %2598 = vsyncadd (%p3452_p6), [#allocation5], 4294966272  ;;  %s2239_s13 = smul.u32 48, %s2764_s28 }
  0x44   : > { %s2767_s14 = scalar_lea.vmem [#allocation7], %s2239_s13 }
  0x45   : > { %2600 = dma.done.wait (%p3453_p10), [#allocation9], 1024   ;;  %p3454_p11 = pmov %p3451_p5 }
  0x46   : > { %s1982_s6 = sshll.u32 %s2684_s22, 3  ;;  %v2627_v6 = vmov 0   ;;  %v2628_v15 = vmov 1   ;;  %v421_v16 = vld [vmem:[%s2767_s14] sm:$0xff]  ;;  %v422_v17 = vld [vmem:[%s2767_s14 + $0x8] sm:$0xff]  ;;  %v385_v23 = vlaneseq  ;;  %s1981_s7 = sshll.u32 %s2764_s28, 6 }
  0x47   : > { %2602 = vsyncadd (%p3454_p11), [#allocation9], 4294966272  ;;  %2308 = vset.pattern.permute.xlu1 %v2627_v6  ;;  %2307 = vset.pattern.permute.xlu0 %v2627_v6  ;;  %p326_p12 = scmp.lt.s32.totalorder %s1982_s6, 15  ;;  %vm423_vm0 = vnez %v421_v16  ;;  %vm424_vm1 = vnez %v422_v17  ;;  %v2813_v41 = vld [vmem:[%s3439_s1] sm:$0x7]  ;;  %s3352_s8 = scalar_lea.vmem [#allocation10], %s1981_s7 }
  0x48   : > { %v425_v18 = vsel %vm423_vm0, 16843009, %v2627_v6  ;;  %v426_v22 = vsel %vm424_vm1, 16843009, %v2627_v6  ;;  %v2807_v29 = vshrl.u32 %v385_v23, 7  ;;  %s2070_s10 = sshll.u32 %s2684_s22, 10 }
  0x49   : > { %s3508_s6 = smov (!%p326_p12, %s1982_s6), 15  ;;  %v427_v19 = vunpack.c.0.s8 %v425_v18  ;;  %v428_v20 = vunpack.c.1.s8 %v425_v18  ;;  %v429_v21 = vunpack.c.2.s8 %v425_v18  ;;  %v431_v27 = vunpack.c.0.s8 %v426_v22  ;;  %s1869_s12 = sshll.u32 %s3352_s8, 4  ;;  %s3394_s12 = int_to_ptr.vmem [resolvable:$true] %s1869_s12 }
  0x4a   : > { %s1983_s15 = sshll.u32 %s3508_s6, 3  ;;  %v430_v28 = vunpack.c.3.s8 %v425_v18  ;;  %v433_v31 = vunpack.c.2.s8 %v426_v22  ;;  %v432_v32 = vunpack.c.1.s8 %v426_v22  ;;  %v387_v37 = vsub.s32 0, %v2807_v29  ;;  %s3392_s13 = scalar_lea.hbm %s3443_s5, %s2070_s10 }
  0x4b   : > { %s329_s23 = scalar_lea.vmem %s3440_s2, %s1983_s15  ;;  %v435_v24 = vpack.c.b16 %v427_v19, %v427_v19  ;;  %v437_v25 = vpack.c.b16 %v428_v20, %v428_v20  ;;  %v439_v26 = vpack.c.b16 %v429_v21, %v429_v21  ;;  %v443_v35 = vpack.c.b16 %v431_v27, %v431_v27  ;;  %s2553_s6 = scalar_lea.vmem %s3394_s12, 1024 }
  0x4c   : > { %v2779_v7 = vld [vmem:[%s329_s23 + $0x10] sm:$0xff]  ;;  %v2781_v8 = vld [vmem:[%s329_s23] sm:$0xff]  ;;  %v2785_v9 = vld [vmem:[%s329_s23 + $0x18] sm:$0xff]  ;;  %v441_v36 = vpack.c.b16 %v430_v28, %v430_v28  ;;  %v447_v38 = vpack.c.b16 %v433_v31, %v433_v31  ;;  %v445_v39 = vpack.c.b16 %v432_v32, %v432_v32  ;;  %v434_v40 = vunpack.c.3.s8 %v426_v22  ;;  %p2554_p0 = scmp.ne.s32.totalorder %s3394_s12, %s2553_s6  ;;  %p3501_p1 = scmp.ne.s32.totalorder %s3447_s29, 0 }
  0x4d   : > { %357 = vperm.xlu1 %2308, %v2779_v7   ;;  %347 = vperm.xlu0 %2307, %v2781_v8   ;;  %v2787_v10 = vld [vmem:[%s329_s23 + $0x8] sm:$0xff]  ;;  %v2793_v12 = vld [vmem:[%s329_s23 + $0x20] sm:$0xff]  ;;  %v2795_v13 = vld [vmem:[%s329_s23 + $0x38] sm:$0xff]  ;;  %v436_v30 = vpack.c.b8 %v435_v24, %v435_v24  ;;  %v438_v33 = vpack.c.b8 %v437_v25, %v437_v25  ;;  %v440_v34 = vpack.c.b8 %v439_v26, %v439_v26  ;;  %s2630_s22 = smov [#allocation10]  }
  0x4e   : > { %v2791_v11 = vld [vmem:[%s329_s23 + $0x28] sm:$0xff]  ;;  %v2797_v14 = vld [vmem:[%s329_s23 + $0x30] sm:$0xff]  ;;  %v444_v42 = vpack.c.b8 %v443_v35, %v443_v35  ;;  %v442_v43 = vpack.c.b8 %v441_v36, %v441_v36  ;;  %v2817_v45 = vrot.slane %v2813_v41, %v387_v37  ;;  %v448_v48 = vpack.c.b8 %v447_v38, %v447_v38  ;;  %p2555_p9 = pnand %p2554_p0, %p3501_p1  ;;  %s2557_s15 = sshll.u32 %s2630_s22, 4  ;;  %s2558_s15 = int_to_ptr.vmem [resolvable:$false] %s2557_s15 }
  0x4f   : > { %vm451_vm2 = vnez %v436_v30  ;;  %vm452_vm3 = vnez %v438_v33  ;;  %vm453_vm4 = vnez %v440_v34  ;;  %v446_v49 = vpack.c.b8 %v445_v39, %v445_v39  ;;  %s2559_s16 = scalar_lea.vmem %s2558_s15, 2048  ;;  %p2560_p2 = scmp.lt.s32.totalorder %s3394_s12, %s2558_s15 }
  0x50   : > { %v459_v44 = vsel %vm451_vm2, 16843009, %v2627_v6  ;;  %v460_v46 = vsel %vm452_vm3, 16843009, %v2627_v6  ;;  %v461_v47 = vsel %vm453_vm4, 16843009, %v2627_v6  ;;  %vm455_vm5 = vnez %v444_v42  ;;  %p2556_p13 = pneg %p2555_p9  ;;  %p2561_p3 = scmp.lt.s32.totalorder %s2559_s16, %s2553_s6 }
  0x51   : > { %362 = vperm.xlu1 %2308, %v2785_v9   ;;  %352 = vperm.xlu0 %2307, %v2787_v10   ;;  %vm454_vm6 = vnez %v442_v43  ;;  %v449_v50 = vpack.c.b16 %v434_v40, %v434_v40  ;;  %v467_v51 = vunpack.c.0.s8 %v459_v44  ;;  %v468_v54 = vunpack.c.0.s8 %v460_v46 }
  0x52   : > { %v469_v55 = vunpack.c.0.s8 %v461_v47  ;;  %v463_v58 = vsel %vm455_vm5, 16843009, %v2627_v6  ;;  %v462_v59 = vsel %vm454_vm6, 16843009, %v2627_v6  ;;  %vm2825_vm7 = vnez %v448_v48  ;;  %p2562_p7 = por %p2561_p3, %p2560_p2 }
  0x53   : > { %vm2829_vm8 = vnez %v446_v49  ;;  %v450_v62 = vpack.c.b8 %v449_v50, %v449_v50  ;;  %vm475_vm10 = vcmp.ne.s32.totalorder %v467_v51, 0  ;;  %vm2833_vm11 = vcmp.ne.s32.totalorder %v468_v54, 0 }
  0x54   : > { %v471_v4 = vunpack.c.0.s8 %v463_v58  ;;  %v470_v5 = vunpack.c.0.s8 %v462_v59  ;;  %vm2839_vm13 = vcmp.ne.s32.totalorder %v469_v55, 0  ;;  %v465_v20 = vsel %vm2825_vm7, 16843009, %v2627_v6  ;;  %p2563_p4 = pnand %p2562_p7, %p2556_p13 }
  0x55   : > { %372 = vperm.xlu1 %2308, %v2791_v11   ;;  %367 = vperm.xlu0 %2307, %v2793_v12   ;;  %v464_v21 = vsel %vm2829_vm8, 16843009, %v2627_v6  ;;  %vm2849_vm14 = vnez %v450_v62  ;;  %v473_v34 = vunpack.c.0.s8 %v465_v20 }
  0x56   : > { %vm2853_vm0 = vcmp.ne.s32.totalorder %v471_v4, 0  ;;  %vm2857_vm2 = vcmp.ne.s32.totalorder %v470_v5, 0  ;;  %v472_v37 = vunpack.c.0.s8 %v464_v21  ;;  %v466_v38 = vsel %vm2849_vm14, 16843009, %v2627_v6 }
  0x57   : > { %vm481_vm5 = vcmp.ne.s32.totalorder %v473_v34, 0  ;;  %v474_v51 = vunpack.c.0.s8 %v466_v38  ;;  %v2314_v38 = vld [vmem:[#allocation4 + $0x30] sm:$0xff]  }
  0x58   : > { %vm480_vm6 = vcmp.ne.s32.totalorder %v472_v37, 0 }
  0x59   : > { %382 = vperm.xlu1 %2308, %v2795_v13   ;;  %377 = vperm.xlu0 %2307, %v2797_v14  }
  0x5d   : > { %2309 = vset.pattern.permute.xlu1 %v2628_v15  ;;  %2310 = vset.pattern.permute.xlu0 %v2628_v15 }
  0xc8   : > { %v358_v52 = vpop.permute.xlu1 %357  ;;  %v348_v53 = vpop.permute.xlu0 %347 }
  0xc9   : > { %v391_v56 = vadd.f32 %v2817_v45, %v358_v52  ;;  %v389_v57 = vadd.f32 %v2817_v45, %v348_v53 }
  0xcb   : > { %v405_v63 = vmul.f32 0.01, %v389_v57  ;;  %vm397_vm9 = vcmp.ge.f32.partialorder %v389_v57, 0.0  ;;  %v407_v0 = vmul.f32 0.01, %v391_v56  ;;  %vm399_vm12 = vcmp.ge.f32.partialorder %v391_v56, 0.0 }
  0xcc   : > { %v363_v1 = vpop.permute.xlu1 %362  ;;  %v353_v2 = vpop.permute.xlu0 %352 }
  0xcd   : > { %v392_v15 = vadd.f32 %v2817_v45, %v363_v1  ;;  %v390_v16 = vadd.f32 %v2817_v45, %v353_v2  ;;  %v413_v17 = vsel %vm397_vm9, %v389_v57, %v405_v63  ;;  %v415_v24 = vsel %vm399_vm12, %v391_v56, %v407_v0 }
  0xce   : > { %v483_v19 = vsel %vm475_vm10, %v413_v17, -1e+30  ;;  %v485_v36 = vsel %vm2839_vm13, %v415_v24, -1e+30  ;;  %vm482_vm9 = vcmp.ne.s32.totalorder %v474_v51, 0 }
  0xcf   : > { %v406_v23 = vmul.f32 0.01, %v390_v16  ;;  %491 = vmax.xlane.f32.xlu0 %v483_v19  ;;  %vm398_vm15 = vcmp.ge.f32.partialorder %v390_v16, 0.0  ;;  %v408_v25 = vmul.f32 0.01, %v392_v15  ;;  %vm400_vm1 = vcmp.ge.f32.partialorder %v392_v15, 0.0 }
  0xd0   : > { %v373_v26 = vpop.permute.xlu1 %372  ;;  %v368_v27 = vpop.permute.xlu0 %367 }
  0xd1   : > { %v394_v31 = vadd.f32 %v2817_v45, %v373_v26  ;;  %v393_v32 = vadd.f32 %v2817_v45, %v368_v27  ;;  %v414_v33 = vsel %vm398_vm15, %v390_v16, %v406_v23  ;;  %v416_v42 = vsel %vm400_vm1, %v392_v15, %v408_v25 }
  0xd2   : > { %v484_v35 = vsel %vm2833_vm11, %v414_v33, -1e+30  ;;  %v486_v50 = vsel %vm2857_vm2, %v416_v42, -1e+30  ;;  %v2317_v42 = vld [vmem:[#allocation4 + $0x18] sm:$0xff]  }
  0xd3   : > { %v410_v39 = vmul.f32 0.01, %v394_v31  ;;  %v409_v40 = vmul.f32 0.01, %v393_v32  ;;  %493 = vmax.xlane.f32.xlu1 %v484_v35  ;;  %495 = vmax.xlane.f32.xlu0 %v485_v36  ;;  %vm401_vm3 = vcmp.ge.f32.partialorder %v393_v32, 0.0  ;;  %vm402_vm4 = vcmp.ge.f32.partialorder %v394_v31, 0.0 }
  0xd4   : > { %v383_v43 = vpop.permute.xlu1 %382  ;;  %v378_v44 = vpop.permute.xlu0 %377 }
  0xd5   : > { %v396_v46 = vadd.f32 %v2817_v45, %v383_v43  ;;  %v395_v47 = vadd.f32 %v2817_v45, %v378_v44  ;;  %v417_v48 = vsel %vm401_vm3, %v393_v32, %v409_v40  ;;  %v418_v54 = vsel %vm402_vm4, %v394_v31, %v410_v39  ;;  %v2315_v39 = vld [vmem:[#allocation4 + $0x28] sm:$0xff]   ;;  %v2316_v40 = vld [vmem:[#allocation4 + $0x20] sm:$0xff]   ;;  %v2318_v43 = vld [vmem:[#allocation4 + $0x10] sm:$0xff]  }
  0xd6   : > { %v487_v49 = vsel %vm2853_vm0, %v417_v48, -1e+30  ;;  %v488_v45 = vsel %vm480_vm6, %v418_v54, -1e+30  ;;  %v2319_v44 = vld [vmem:[#allocation4 + $0x8] sm:$0xff]  }
  0xd7   : > { %v412_v52 = vmul.f32 0.01, %v396_v46  ;;  %v411_v53 = vmul.f32 0.01, %v395_v47  ;;  %499 = vmax.xlane.f32.xlu1 %v487_v49  ;;  %497 = vmax.xlane.f32.xlu0 %v486_v50  ;;  %vm403_vm7 = vcmp.ge.f32.partialorder %v395_v47, 0.0  ;;  %vm404_vm8 = vcmp.ge.f32.partialorder %v396_v46, 0.0 }
  0xd8   : > { %v1993_v54 = vld [vmem:[%s2767_s14 + $0x18] sm:$0xff] }
  0xd9   : > { %v419_v55 = vsel %vm403_vm7, %v395_v47, %v411_v53  ;;  %v420_v57 = vsel %vm404_vm8, %v396_v46, %v412_v52  ;;  %v2320_v46 = vld [vmem:[#allocation4] sm:$0xff]   ;;  %v2629_v47 = vmov 2   ;;  %vm675_vm14 = vnez %v1993_v54 }
  0xda   : > { %v489_v56 = vsel %vm481_vm5, %v419_v55, -1e+30  ;;  %v490_v58 = vsel %vm482_vm9, %v420_v57, -1e+30 }
  0xdb   : > { %503 = vmax.xlane.f32.xlu1 %v489_v56  ;;  %501 = vmax.xlane.f32.xlu0 %v488_v45 }
  0xdf   : > { %505 = vmax.xlane.f32.xlu0 %v490_v58 }
  0xec   : > { %604 = vperm.xlu1 %2309, %v2781_v8  }
 0x158   : > { %v492_v59 = vpop.xlane.xlu0 %491 }
 0x159   : > { %v507_v60 = vsub.f32 %v483_v19, %v492_v59 }
 0x15b   : > { %v515_v61 = vmul.f32 1.442695, %v507_v60  ;;  %v2002_v60 = vld [vmem:[%s2767_s14 + $0x20] sm:$0xff] }
 0x15c   : > { %v494_v62 = vpop.xlane.xlu1 %493  ;;  %v496_v63 = vpop.xlane.xlu0 %495  ;;  %vm925_vm15 = vnez %v2002_v60 }
 0x15d   : > { %2341 = vpow2.f32 %v515_v61  ;;  %v508_v0 = vsub.f32 %v484_v35, %v494_v62  ;;  %v509_v1 = vsub.f32 %v485_v36, %v496_v63  ;;  %v2313_v36 = vld [vmem:[#allocation4 + $0x38] sm:$0xff]  }
 0x15e   : > { %2174 = vmatprep.subr.bf16.mxu0 %v2313_v36 }
 0x15f   : > { %v517_v2 = vmul.f32 1.442695, %v508_v0  ;;  %v519_v3 = vmul.f32 1.442695, %v509_v1  ;;  %2175 = vmatpush3.bf16.msra.mxu0 %v2313_v36 }
 0x160   : > { %v500_v4 = vpop.xlane.xlu1 %499  ;;  %v498_v5 = vpop.xlane.xlu0 %497  ;;  %2176 = vmatprep.subr.bf16.mxu0 %v2314_v38 }
 0x161   : > { %2343 = vpow2.f32 %v517_v2  ;;  %v511_v15 = vsub.f32 %v487_v49, %v500_v4  ;;  %v510_v16 = vsub.f32 %v486_v50, %v498_v5 }
 0x162   : > { %2345 = vpow2.f32 %v519_v3 }
 0x163   : > { %v523_v17 = vmul.f32 1.442695, %v511_v15  ;;  %v521_v18 = vmul.f32 1.442695, %v510_v16  ;;  %2177 = vmatpush3.bf16.msra.mxu0 %v2314_v38 }
 0x164   : > { %v504_v20 = vpop.xlane.xlu1 %503  ;;  %v502_v21 = vpop.xlane.xlu0 %501  ;;  %2178 = vmatprep.subr.bf16.mxu0 %v2315_v39 }
 0x165   : > { %2347 = vpow2.f32 %v523_v17  ;;  %v513_v19 = vsub.f32 %v489_v56, %v504_v20  ;;  %v512_v22 = vsub.f32 %v488_v45, %v502_v21  ;;  %v2931_v17 = vsel %vm925_vm15, 16843009, %v2627_v6 }
 0x166   : > { %2349 = vpow2.f32 %v521_v18 }
 0x167   : > { %v527_v23 = vmul.f32 1.442695, %v513_v19  ;;  %v525_v24 = vmul.f32 1.442695, %v512_v22  ;;  %2179 = vmatpush3.bf16.msra.mxu0 %v2315_v39 }
 0x168   : > { %v506_v25 = vpop.xlane.xlu0 %505  ;;  %2180 = vmatprep.subr.bf16.mxu0 %v2316_v40 }
 0x169   : > { %2351 = vpow2.f32 %v527_v23  ;;  %v514_v26 = vsub.f32 %v490_v58, %v506_v25  ;;  %v677_v58 = vsel %vm675_vm14, 16843009, %v2627_v6  ;;  %v929_v25 = vunpack.c.0.s8 %v2931_v17 }
 0x16a   : > { %v2877_v27 = vpop.eup %2341  ;;  %2353 = vpow2.f32 %v525_v24  ;;  %v683_v62 = vunpack.c.1.s8 %v677_v58  ;;  %v682_v1 = vunpack.c.0.s8 %v677_v58  ;;  %v684_v4 = vunpack.c.2.s8 %v677_v58 }
 0x16b   : > { %v529_v28 = vmul.f32 1.442695, %v514_v26  ;;  %531 = vadd.xlane.f32.xlu1 %v2877_v27  ;;  %2181 = vmatpush3.bf16.msra.mxu0 %v2316_v40  ;;  %v685_v16 = vunpack.c.3.s8 %v677_v58 }
 0x16c   : > { %2182 = vmatprep.subr.bf16.mxu0 %v2317_v42  ;;  %v696_v15 = vpack.c.b16 %v683_v62, %v683_v62  ;;  %v694_v20 = vpack.c.b16 %v682_v1, %v682_v1  ;;  %v698_v22 = vpack.c.b16 %v684_v4, %v684_v4 }
 0x16d   : > { %2355 = vpow2.f32 %v529_v28  ;;  %v700_v24 = vpack.c.b16 %v685_v16, %v685_v16 }
 0x16e   : > { %v2880_v30 = vpop.eup %2343  ;;  %v697_v23 = vpack.c.b8 %v696_v15, %v696_v15  ;;  %v695_v26 = vpack.c.b8 %v694_v20, %v694_v20  ;;  %v699_v40 = vpack.c.b8 %v698_v22, %v698_v22 }
 0x16f   : > { %v2882_v31 = vpop.eup %2345  ;;  %533 = vadd.xlane.f32.xlu0 %v2880_v30  ;;  %2183 = vmatpush3.bf16.msra.mxu0 %v2317_v42  ;;  %v701_v42 = vpack.c.b8 %v700_v24, %v700_v24 }
 0x170   : > { %535 = vadd.xlane.f32.xlu1 %v2882_v31  ;;  %2184 = vmatprep.subr.bf16.mxu0 %v2318_v43  ;;  %vm707_vm3 = vnez %v697_v23  ;;  %vm2937_vm4 = vnez %v695_v26  ;;  %vm708_vm5 = vnez %v699_v40 }
 0x171   : > { %vm709_vm6 = vnez %v701_v42  ;;  %v714_v54 = vsel %vm2937_vm4, 16843009, %v2627_v6 }
 0x172   : > { %v2886_v32 = vpop.eup %2347  ;;  %v722_v62 = vunpack.c.0.s8 %v714_v54 }
 0x173   : > { %v2888_v33 = vpop.eup %2349  ;;  %2185 = vmatpush3.bf16.msra.mxu0 %v2318_v43  ;;  %v937_v43 = vpack.c.b16 %v929_v25, %v929_v25 }
 0x174   : > { %539 = vadd.xlane.f32.xlu1 %v2886_v32  ;;  %537 = vadd.xlane.f32.xlu0 %v2888_v33 }
 0x175   : > { %2186 = vmatprep.subr.bf16.mxu0 %v2319_v44 }
 0x176   : > { %v2892_v34 = vpop.eup %2351 }
 0x177   : > { %v2894_v35 = vpop.eup %2353  ;;  %2187 = vmatpush3.bf16.msra.mxu0 %v2319_v44 }
 0x178   : > { %543 = vadd.xlane.f32.xlu1 %v2892_v34  ;;  %541 = vadd.xlane.f32.xlu0 %v2894_v35 }
 0x179   : > { %2188 = vmatprep.subr.bf16.mxu0 %v2320_v46 }
 0x17a   : > { %v2898_v37 = vpop.eup %2355 }
 0x17b   : > { %2189 = vmatpush3.bf16.msra.mxu0 %v2320_v46 }
 0x17c   : > { %545 = vadd.xlane.f32.xlu0 %v2898_v37 }
 0x189   : > { %612 = vperm.xlu1 %2309, %v2779_v7  }
 0x18d   : > { %616 = vperm.xlu1 %2309, %v2785_v9  }
 0x191   : > { %620 = vperm.xlu1 %2309, %v2793_v12  }
 0x192   : > { %608 = vperm.xlu0 %2310, %v2787_v10  }
 0x195   : > { %624 = vperm.xlu1 %2309, %v2791_v11  }
 0x196   : > { %2312 = vset.pattern.permute.xlu0 %v2629_v47 }
 0x197   : > { %863 = vperm.xlu0 %2312, %v2779_v7   ;;  %v1992_v7 = vld [vmem:[%s2767_s14 + $0x10] sm:$0xff] }
 0x198   : > { %vm674_vm10 = vnez %v1992_v7 }
 0x199   : > { %628 = vperm.xlu1 %2309, %v2797_v14   ;;  %v676_v48 = vsel %vm674_vm10, 16843009, %v2627_v6 }
 0x19a   : > { %v680_v55 = vunpack.c.2.s8 %v676_v48  ;;  %v681_v56 = vunpack.c.3.s8 %v676_v48  ;;  %v679_v57 = vunpack.c.1.s8 %v676_v48 }
 0x19b   : > { %875 = vperm.xlu0 %2312, %v2791_v11   ;;  %v678_v11 = vunpack.c.0.s8 %v676_v48 }
 0x19c   : > { %v690_v59 = vpack.c.b16 %v680_v55, %v680_v55  ;;  %v692_v61 = vpack.c.b16 %v681_v56, %v681_v56  ;;  %v688_v0 = vpack.c.b16 %v679_v57, %v679_v57  ;;  %v2950_v56 = vsel %vm708_vm5, 16843009, %v2627_v6 }
 0x19d   : > { %632 = vperm.xlu1 %2309, %v2795_v13   ;;  %v686_v49 = vpack.c.b16 %v678_v11, %v678_v11 }
 0x19e   : > { %v691_v3 = vpack.c.b8 %v690_v59, %v690_v59  ;;  %v693_v5 = vpack.c.b8 %v692_v61, %v692_v61  ;;  %v689_v18 = vpack.c.b8 %v688_v0, %v688_v0 }
 0x19f   : > { %883 = vperm.xlu0 %2312, %v2795_v13   ;;  %v637_v13 = vsub.s32 1, %v2807_v29  ;;  %v687_v50 = vpack.c.b8 %v686_v49, %v686_v49  ;;  %v715_v49 = vsel %vm707_vm3, 16843009, %v2627_v6 }
 0x1a0   : > { %vm704_vm0 = vnez %v691_v3  ;;  %vm705_vm1 = vnez %v693_v5  ;;  %vm703_vm2 = vnez %v689_v18  ;;  %v723_v55 = vunpack.c.0.s8 %v715_v49 }
 0x1a1   : > { %2311 = vset.pattern.permute.xlu1 %v2629_v47  ;;  %vm702_vm11 = vnez %v687_v50  ;;  %v713_v38 = vsel %vm705_vm1, 16843009, %v2627_v6  ;;  %v712_v39 = vsel %vm704_vm0, 16843009, %v2627_v6  ;;  %v711_v44 = vsel %vm703_vm2, 16843009, %v2627_v6 }
 0x1a2   : > { %855 = vperm.xlu1 %2311, %v2781_v8   ;;  %v2920_v8 = vrot.slane %v2813_v41, %v637_v13  ;;  %v721_v11 = vunpack.c.0.s8 %v713_v38  ;;  %v720_v13 = vunpack.c.0.s8 %v712_v39  ;;  %v2003_v50 = vld [vmem:[%s2767_s14 + $0x28] sm:$0xff]  ;;  %vm3004_vm0 = vcmp.ne.s32.totalorder %v722_v62, 0  ;;  %s1856_s14 = scalar_lea.sflag [#allocation6], %s2764_s28 }
 0x1a3   : > { %vm926_vm7 = vnez %v2003_v50 }
 0x1a4   : > { %vm2953_vm8 = vcmp.ne.s32.totalorder %v721_v11, 0  ;;  %v2976_v3 = vsel %vm926_vm7, 16843009, %v2627_v6 }
 0x1a5   : > { %v934_v38 = vunpack.c.1.s8 %v2976_v3  ;;  %v936_v42 = vunpack.c.3.s8 %v2976_v3 }
 0x1a6   : > { %859 = vperm.xlu1 %2311, %v2787_v10   ;;  %v605_v10 = vpop.permute.xlu1 %604 }
 0x1a7   : > { %v947_v59 = vpack.c.b16 %v934_v38, %v934_v38 }
 0x1aa   : > { %867 = vperm.xlu1 %2311, %v2785_v9   ;;  %v639_v9 = vadd.f32 %v2920_v8, %v605_v10 }
 0x1ac   : > { %vm647_vm12 = vcmp.ge.f32.partialorder %v639_v9, 0.0 }
 0x1ae   : > { %871 = vperm.xlu1 %2311, %v2793_v12   ;;  %v710_v12 = vsel %vm702_vm11, 16843009, %v2627_v6 }
 0x1af   : > { %v718_v51 = vunpack.c.0.s8 %v710_v12  ;;  %v938_v12 = vpack.c.b8 %v937_v43, %v937_v43 }
 0x1b1   : > { %vm726_vm13 = vcmp.ne.s32.totalorder %v718_v51, 0  ;;  %vm2966_vm10 = vnez %v938_v12  ;;  %v933_v12 = vunpack.c.0.s8 %v2976_v3 }
 0x1b2   : > { %879 = vperm.xlu1 %2311, %v2797_v14   ;;  %v655_v14 = vmul.f32 0.01, %v639_v9  ;;  %v2992_v23 = vsel %vm2966_vm10, 16843009, %v2627_v6 }
 0x1b3   : > { %v945_v15 = vpack.c.b16 %v933_v12, %v933_v12 }
 0x1b4   : > { %v663_v52 = vsel %vm647_vm12, %v639_v9, %v655_v14  ;;  %v719_v9 = vunpack.c.0.s8 %v711_v44  ;;  %vm2978_vm12 = vcmp.ne.s32.totalorder %v723_v55, 0 }
 0x1b5   : > { %v2924_v53 = vsel %vm726_vm13, %v663_v52, -1e+30  ;;  %v888_v52 = vsub.s32 2, %v2807_v29  ;;  %v931_v29 = vunpack.c.2.s8 %v2931_v17  ;;  %vm2982_vm13 = vcmp.ne.s32.totalorder %v720_v13, 0 }
 0x1b6   : > { %vm2962_vm9 = vcmp.ne.s32.totalorder %v719_v9, 0  ;;  %v946_v38 = vpack.c.b8 %v945_v15, %v945_v15 }
 0x1b7   : > { %v2972_v1 = vrot.slane %v2813_v41, %v888_v52  ;;  %v941_v24 = vpack.c.b16 %v931_v29, %v931_v29 }
 0x1b9   : > { %v942_v49 = vpack.c.b8 %v941_v24, %v941_v24 }
 0x1bb   : > { %vm3038_vm5 = vnez %v942_v49 }
 0x1d6   : > { %742 = vmax.xlane.f32.xlu1 %v2924_v53 }
 0x1f4   : > { %v532_v45 = vpop.xlane.xlu1 %531 }
 0x1f5   : > { %2357 = vrcp.f32 %v532_v45  ;;  %v930_v45 = vunpack.c.1.s8 %v2931_v17 }
 0x1f7   : > { %v939_v41 = vpack.c.b16 %v930_v45, %v930_v45 }
 0x1f8   : > { %v534_v63 = vpop.xlane.xlu0 %533 }
 0x1f9   : > { %v536_v2 = vpop.xlane.xlu1 %535  ;;  %2359 = vrcp.f32 %v534_v63  ;;  %v940_v11 = vpack.c.b8 %v939_v41, %v939_v41  ;;  %v935_v41 = vunpack.c.2.s8 %v2976_v3  ;;  %v963_v3 = vsel %vm3038_vm5, 16843009, %v2627_v6 }
 0x1fa   : > { %2361 = vrcp.f32 %v536_v2  ;;  %v724_v2 = vunpack.c.0.s8 %v2950_v56 }
 0x1fb   : > { %vm3025_vm4 = vnez %v940_v11  ;;  %v2332_v11 = vld [vmem:[#allocation8] sm:$0xff]  }
 0x1fc   : > { %vm3018_vm1 = vcmp.ne.s32.totalorder %v724_v2, 0 }
 0x1fd   : > { %v540_v21 = vpop.xlane.xlu1 %539  ;;  %v538_v19 = vpop.xlane.xlu0 %537 }
 0x1fe   : > { %2363 = vrcp.f32 %v538_v19 }
 0x1ff   : > { %2365 = vrcp.f32 %v540_v21 }
 0x201   : > { %v544_v28 = vpop.xlane.xlu1 %543  ;;  %v542_v36 = vpop.xlane.xlu0 %541 }
 0x202   : > { %2367 = vrcp.f32 %v544_v28  ;;  %v2358_v46 = vpop.eup %2357 }
 0x203   : > { %2369 = vrcp.f32 %v542_v36  ;;  %v555_v14 = vmul.f32 %v2358_v46, %v2877_v27  ;;  %v2958_v27 = vsel %vm709_vm6, 16843009, %v2627_v6  ;;  %v932_v36 = vunpack.c.3.s8 %v2931_v17 }
 0x204   : > { %v725_v18 = vunpack.c.0.s8 %v2958_v27 }
 0x205   : > { %v613_v7 = vpop.permute.xlu1 %612  ;;  %v546_v48 = vpop.xlane.xlu0 %545  ;;  %v943_v9 = vpack.c.b16 %v932_v36, %v932_v36 }
 0x206   : > { %v2360_v10 = vpop.eup %2359  ;;  %2371 = vrcp.f32 %v546_v48  ;;  %v641_v0 = vadd.f32 %v2920_v8, %v613_v7  ;;  %vm3049_vm6 = vcmp.ne.s32.totalorder %v725_v18, 0 }
 0x207   : > { %v556_v51 = vmul.f32 %v2360_v10, %v2880_v30  ;;  %v2362_v30 = vpop.eup %2361 }
 0x208   : > { %v557_v20 = vmul.f32 %v2362_v30, %v2882_v31  ;;  %v657_v40 = vmul.f32 0.01, %v641_v0  ;;  %vm649_vm15 = vcmp.ge.f32.partialorder %v641_v0, 0.0 }
 0x209   : > { %v2074_v57 = vpack.c.bf16 %v556_v51, %v555_v14  ;;  %v617_v58 = vpop.permute.xlu1 %616 }
 0x20a   : > { %v642_v60 = vadd.f32 %v2920_v8, %v617_v58 }
 0x20b   : > { %2075 = vst [vmem:[#allocation2] sm:$0xff] %v2074_v57   ;;  %v2364_v4 = vpop.eup %2363  ;;  %v969_v57 = vunpack.c.0.s8 %v2992_v23 }
 0x20c   : > { %v658_v5 = vmul.f32 0.01, %v642_v60  ;;  %vm650_vm11 = vcmp.ge.f32.partialorder %v642_v60, 0.0  ;;  %v558_v21 = vmul.f32 %v2364_v4, %v2888_v33  ;;  %v2366_v25 = vpop.eup %2365 }
 0x20d   : > { %v621_v19 = vpop.permute.xlu1 %620  ;;  %v609_v22 = vpop.permute.xlu0 %608  ;;  %v559_v47 = vmul.f32 %v2366_v25, %v2886_v32 }
 0x20e   : > { %v640_v26 = vadd.f32 %v2920_v8, %v609_v22  ;;  %v666_v28 = vsel %vm650_vm11, %v642_v60, %v658_v5  ;;  %v2079_v31 = vpack.c.bf16 %v558_v21, %v557_v20  ;;  %v643_v44 = vadd.f32 %v2920_v8, %v621_v19 }
 0x20f   : > { %v2368_v39 = vpop.eup %2367  ;;  %v2999_v33 = vsel %vm2953_vm8, %v666_v28, -1e+30  ;;  %v944_v60 = vpack.c.b8 %v943_v9, %v943_v9  ;;  %v962_v22 = vsel %vm3025_vm4, 16843009, %v2627_v6  ;;  %vm3057_vm8 = vcmp.ne.s32.totalorder %v969_v57, 0 }
 0x210   : > { %v2370_v43 = vpop.eup %2369  ;;  %v656_v46 = vmul.f32 0.01, %v640_v26  ;;  %748 = vmax.xlane.f32.xlu1 %v2999_v33  ;;  %vm648_vm14 = vcmp.ge.f32.partialorder %v640_v26, 0.0  ;;  %2131 = vst [vmem:[#allocation2 + $0x8] sm:$0xff] %v2079_v31   ;;  %v561_v51 = vmul.f32 %v2368_v39, %v2892_v34  ;;  %v659_v56 = vmul.f32 0.01, %v643_v44 }
 0x211   : > { %v560_v7 = vmul.f32 %v2370_v43, %v2894_v35  ;;  %v625_v48 = vpop.permute.xlu1 %624  ;;  %v665_v35 = vsel %vm649_vm15, %v641_v0, %v657_v40  ;;  %vm651_vm3 = vcmp.ge.f32.partialorder %v643_v44, 0.0  ;;  %v951_v0 = vpack.c.b16 %v936_v42, %v936_v42 }
 0x212   : > { %v644_v13 = vadd.f32 %v2920_v8, %v625_v48  ;;  %v664_v50 = vsel %vm648_vm14, %v640_v26, %v656_v46  ;;  %v2321_v10 = vld [vmem:[#allocation2] sm:$0xff]   ;;  %v3036_v62 = vsel %vm2982_vm13, %v665_v35, -1e+30  ;;  %v864_v4 = vpop.permute.xlu0 %863  ;;  %v667_v5 = vsel %vm651_vm3, %v643_v44, %v659_v56 }
 0x213   : > { %v2372_v14 = vpop.eup %2371  ;;  %v2084_v52 = vpack.c.bf16 %v560_v7, %v559_v47  ;;  %v3015_v32 = vsel %vm2962_vm9, %v664_v50, -1e+30  ;;  %2190 = vmatprep.mubr.bf16.mxu0 %v2321_v10  ;;  %v892_v21 = vadd.f32 %v2972_v1, %v864_v4  ;;  %vm3064_vm9 = vnez %v944_v60 }
 0x214   : > { %v562_v55 = vmul.f32 %v2372_v14, %v2898_v37  ;;  %v660_v45 = vmul.f32 0.01, %v644_v13  ;;  %744 = vmax.xlane.f32.xlu0 %v3015_v32  ;;  %vm652_vm2 = vcmp.ge.f32.partialorder %v644_v13, 0.0  ;;  %v3070_v18 = vsel %vm3004_vm0, %v667_v5, -1e+30 }
 0x215   : > { %2132 = vst [vmem:[#allocation2 + $0x10] sm:$0xff] %v2084_v52   ;;  %v629_v34 = vpop.permute.xlu1 %628  ;;  %v948_v26 = vpack.c.b8 %v947_v59, %v947_v59  ;;  %v970_v36 = vunpack.c.0.s8 %v962_v22  ;;  %v949_v39 = vpack.c.b16 %v935_v41, %v935_v41  ;;  %v908_v31 = vmul.f32 0.01, %v892_v21 }
 0x216   : > { %v2089_v29 = vpack.c.bf16 %v562_v55, %v561_v51  ;;  %v645_v30 = vadd.f32 %v2920_v8, %v629_v34  ;;  %v668_v37 = vsel %vm652_vm2, %v644_v13, %v660_v45  ;;  %v971_v43 = vunpack.c.0.s8 %v963_v3  ;;  %v876_v7 = vpop.permute.xlu0 %875 }
 0x217   : > { %v3032_v61 = vsel %vm2978_vm12, %v668_v37, -1e+30  ;;  %v2322_v20 = vld [vmem:[#allocation2 + $0x8] sm:$0xff]   ;;  %v964_v44 = vsel %vm3064_vm9, 16843009, %v2627_v6  ;;  %vm900_vm11 = vcmp.ge.f32.partialorder %v892_v21, 0.0  ;;  %vm3085_vm12 = vnez %v948_v26 }
 0x218   : > { %2133 = vst [vmem:[#allocation2 + $0x18] sm:$0xff] %v2089_v29   ;;  %v661_v2 = vmul.f32 0.01, %v645_v30  ;;  %752 = vmax.xlane.f32.xlu1 %v3032_v61  ;;  %746 = vmax.xlane.f32.xlu0 %v3036_v62  ;;  %vm653_vm7 = vcmp.ge.f32.partialorder %v645_v30, 0.0  ;;  %vm957_vm14 = vnez %v946_v38  ;;  %v950_v50 = vpack.c.b8 %v949_v39, %v949_v39 }
 0x219   : > { %v633_v16 = vpop.permute.xlu1 %632  ;;  %2191 = vmatmul.mubr.bf16.vlgmr.msra.gmra.mxu0 %v2322_v20  ;;  %vm3091_vm15 = vcmp.ne.s32.totalorder %v970_v36, 0  ;;  %v916_v52 = vsel %vm900_vm11, %v892_v21, %v908_v31  ;;  %v972_v54 = vunpack.c.0.s8 %v964_v44  ;;  %v965_v55 = vsel %vm957_vm14, 16843009, %v2627_v6  ;;  %v2329_v44 = vld [vmem:[#allocation8 + $0x18] sm:$0xff]  }
 0x21a   : > { %v646_v23 = vadd.f32 %v2920_v8, %v633_v16  ;;  %v669_v25 = vsel %vm653_vm7, %v645_v30, %v661_v2  ;;  %v952_v8 = vpack.c.b8 %v951_v0, %v951_v0  ;;  %v966_v56 = vsel %vm3085_vm12, 16843009, %v2627_v6  ;;  %v884_v57 = vpop.permute.xlu0 %883 }
 0x21b   : > { %v3079_v47 = vsel %vm3018_vm1, %v669_v25, -1e+30  ;;  %vm979_vm1 = vcmp.ne.s32.totalorder %v971_v43, 0  ;;  %v895_v45 = vadd.f32 %v2972_v1, %v876_v7  ;;  %vm959_vm3 = vnez %v950_v50  ;;  %v2328_v43 = vld [vmem:[#allocation8 + $0x20] sm:$0xff]  }
 0x21c   : > { %v662_v28 = vmul.f32 0.01, %v646_v23  ;;  %750 = vmax.xlane.f32.xlu0 %v3070_v18  ;;  %v2323_v42 = vld [vmem:[#allocation2 + $0x10] sm:$0xff]   ;;  %vm654_vm10 = vcmp.ge.f32.partialorder %v646_v23, 0.0  ;;  %vm3095_vm0 = vnez %v952_v8  ;;  %v3111_v59 = vsel %vm979_vm1, %v916_v52, -1e+30 }
 0x21d   : > { %v856_v40 = vpop.permute.xlu1 %855  ;;  %2194 = vmatprep.mubr.bf16.mxu0 %v2323_v42  ;;  %v974_v37 = vunpack.c.0.s8 %v966_v56  ;;  %v968_v60 = vsel %vm3095_vm0, 16843009, %v2627_v6  ;;  %vm980_vm4 = vcmp.ne.s32.totalorder %v972_v54, 0  ;;  %v973_v0 = vunpack.c.0.s8 %v965_v55  ;;  %v2327_v42 = vld [vmem:[#allocation8 + $0x28] sm:$0xff]  }
 0x21e   : > { %v890_v46 = vadd.f32 %v2972_v1, %v856_v40  ;;  %v670_v17 = vsel %vm654_vm10, %v646_v23, %v662_v28  ;;  %v967_v2 = vsel %vm959_vm3, 16843009, %v2627_v6  ;;  %v911_v4 = vmul.f32 0.01, %v895_v45  ;;  %v2326_v40 = vld [vmem:[#allocation8 + $0x30] sm:$0xff]  }
 0x21f   : > { %v3083_v48 = vsel %vm3049_vm6, %v670_v17, -1e+30  ;;  %v2324_v13 = vld [vmem:[#allocation2 + $0x18] sm:$0xff]   ;;  %v897_v5 = vadd.f32 %v2972_v1, %v884_v57  ;;  %vm903_vm6 = vcmp.ge.f32.partialorder %v895_v45, 0.0  ;;  %v976_v21 = vunpack.c.0.s8 %v968_v60  ;;  %v2331_v17 = vld [vmem:[#allocation8 + $0x8] sm:$0xff]  }
 0x220   : > { %v906_v49 = vmul.f32 0.01, %v890_v46  ;;  %756 = vmax.xlane.f32.xlu1 %v3083_v48  ;;  %754 = vmax.xlane.f32.xlu0 %v3079_v47  ;;  %vm898_vm13 = vcmp.ge.f32.partialorder %v890_v46, 0.0  ;;  %vm981_vm7 = vcmp.ne.s32.totalorder %v973_v0, 0  ;;  %v975_v6 = vunpack.c.0.s8 %v967_v2 }
 0x221   : > { %v860_v10 = vpop.permute.xlu1 %859  ;;  %2195 = vmatmul.mubr.bf16.gmra.mxu0 %v2324_v13  ;;  %v913_v22 = vmul.f32 0.01, %v897_v5  ;;  %v919_v24 = vsel %vm903_vm6, %v895_v45, %v911_v4  ;;  %vm905_vm10 = vcmp.ge.f32.partialorder %v897_v5, 0.0  ;;  %vm984_vm11 = vcmp.ne.s32.totalorder %v976_v21, 0 }
 0x222   : > { %v891_v14 = vadd.f32 %v2972_v1, %v860_v10  ;;  %v914_v51 = vsel %vm898_vm13, %v890_v46, %v906_v49  ;;  %vm983_vm13 = vcmp.ne.s32.totalorder %v975_v6, 0  ;;  %v2330_v46 = vld [vmem:[#allocation8 + $0x10] sm:$0xff]  }
 0x223   : > { %v3103_v35 = vsel %vm3057_vm8, %v914_v51, -1e+30  ;;  %vm982_vm8 = vcmp.ne.s32.totalorder %v974_v37, 0  ;;  %v921_v36 = vsel %vm905_vm10, %v897_v5, %v913_v22 }
 0x224   : > { %v907_v34 = vmul.f32 0.01, %v891_v14  ;;  %993 = vmax.xlane.f32.xlu0 %v3103_v35  ;;  %vm899_vm2 = vcmp.ge.f32.partialorder %v891_v14, 0.0  ;;  %v3132_v8 = vsel %vm982_vm8, %v919_v24, -1e+30 }
 0x225   : > { %v868_v58 = vpop.permute.xlu1 %867  ;;  %v3138_v31 = vsel %vm984_vm11, %v921_v36, -1e+30 }
 0x226   : > { %v893_v29 = vadd.f32 %v2972_v1, %v868_v58  ;;  %v915_v30 = vsel %vm899_vm2, %v891_v14, %v907_v34 }
 0x227   : > { %v3119_v63 = vsel %vm3091_vm15, %v915_v30, -1e+30 }
 0x228   : > { %v909_v15 = vmul.f32 0.01, %v893_v29  ;;  %995 = vmax.xlane.f32.xlu1 %v3119_v63  ;;  %997 = vmax.xlane.f32.xlu0 %v3111_v59  ;;  %vm901_vm5 = vcmp.ge.f32.partialorder %v893_v29, 0.0 }
 0x229   : > { %v872_v41 = vpop.permute.xlu1 %871 }
 0x22a   : > { %v894_v16 = vadd.f32 %v2972_v1, %v872_v41  ;;  %v917_v20 = vsel %vm901_vm5, %v893_v29, %v909_v15 }
 0x22b   : > { %v3126_v19 = vsel %vm980_vm4, %v917_v20, -1e+30 }
 0x22c   : > { %v910_v23 = vmul.f32 0.01, %v894_v16  ;;  %999 = vmax.xlane.f32.xlu1 %v3126_v19  ;;  %vm902_vm9 = vcmp.ge.f32.partialorder %v894_v16, 0.0 }
 0x22d   : > { %v880_v3 = vpop.permute.xlu1 %879 }
 0x22e   : > { %v896_v27 = vadd.f32 %v2972_v1, %v880_v3  ;;  %v918_v25 = vsel %vm902_vm9, %v894_v16, %v910_v23  ;;  %v2325_v1 = vld [vmem:[#allocation8 + $0x38] sm:$0xff]  }
 0x22f   : > { %v3130_v26 = vsel %vm981_vm7, %v918_v25, -1e+30  ;;  %2214 = vmatprep.subr.bf16.mxu1 %v2325_v1 }
 0x230   : > { %v912_v28 = vmul.f32 0.01, %v896_v27  ;;  %1001 = vmax.xlane.f32.xlu0 %v3130_v26  ;;  %1003 = vmax.xlane.f32.xlu1 %v3132_v8  ;;  %vm904_vm12 = vcmp.ge.f32.partialorder %v896_v27, 0.0 }
 0x231   : > { %2215 = vmatpush3.bf16.msra.mxu1 %v2325_v1 }
 0x232   : > { %v920_v38 = vsel %vm904_vm12, %v896_v27, %v912_v28  ;;  %2216 = vmatprep.subr.bf16.mxu1 %v2326_v40 }
 0x233   : > { %v3136_v39 = vsel %vm983_vm13, %v920_v38, -1e+30 }
 0x234   : > { %1005 = vmax.xlane.f32.xlu0 %v3136_v39  ;;  %1007 = vmax.xlane.f32.xlu1 %v3138_v31 }
 0x235   : > { %2217 = vmatpush3.bf16.msra.mxu1 %v2326_v40 }
 0x236   : > { %2218 = vmatprep.subr.bf16.mxu1 %v2327_v42 }
 0x239   : > { %2219 = vmatpush3.bf16.msra.mxu1 %v2327_v42 }
 0x23a   : > { %2220 = vmatprep.subr.bf16.mxu1 %v2328_v43 }
 0x23d   : > { %2221 = vmatpush3.bf16.msra.mxu1 %v2328_v43 }
 0x23e   : > { %2222 = vmatprep.subr.bf16.mxu1 %v2329_v44 }
 0x241   : > { %2223 = vmatpush3.bf16.msra.mxu1 %v2329_v44 }
 0x242   : > { %2224 = vmatprep.subr.bf16.mxu1 %v2330_v46 }
 0x245   : > { %2225 = vmatpush3.bf16.msra.mxu1 %v2330_v46 }
 0x246   : > { %2226 = vmatprep.subr.bf16.mxu1 %v2331_v17 }
 0x249   : > { %2227 = vmatpush3.bf16.msra.mxu1 %v2331_v17 }
 0x24a   : > { %2228 = vmatprep.subr.bf16.mxu1 %v2332_v11 }
 0x24d   : > { %2229 = vmatpush3.bf16.msra.mxu1 %v2332_v11 }
 0x25f   : > { %v743_v7 = vpop.xlane.xlu1 %742 }
 0x260   : > { %v758_v49 = vsub.f32 %v2924_v53, %v743_v7 }
 0x262   : > { %v766_v13 = vmul.f32 1.442695, %v758_v49 }
 0x264   : > { %2373 = vpow2.f32 %v766_v13 }
 0x271   : > { %v3143_v50 = vpop.eup %2373 }
 0x272   : > { %782 = vadd.xlane.f32.xlu0 %v3143_v50 }
 0x299   : > { %v749_v10 = vpop.xlane.xlu1 %748 }
 0x29a   : > { %v761_v12 = vsub.f32 %v2999_v33, %v749_v10 }
 0x29c   : > { %v772_v55 = vmul.f32 1.442695, %v761_v12 }
 0x29d   : > { %v745_v9 = vpop.xlane.xlu0 %744 }
 0x29e   : > { %v759_v14 = vsub.f32 %v3015_v32, %v745_v9 }
 0x2a0   : > { %v768_v51 = vmul.f32 1.442695, %v759_v14 }
 0x2a1   : > { %v753_v52 = vpop.xlane.xlu1 %752  ;;  %v747_v54 = vpop.xlane.xlu0 %746 }
 0x2a2   : > { %2375 = vpow2.f32 %v768_v51  ;;  %v763_v53 = vsub.f32 %v3032_v61, %v753_v52  ;;  %v760_v56 = vsub.f32 %v3036_v62, %v747_v54 }
 0x2a3   : > { %2377 = vpow2.f32 %v772_v55 }
 0x2a4   : > { %v770_v45 = vmul.f32 1.442695, %v760_v56  ;;  %v776_v34 = vmul.f32 1.442695, %v763_v53 }
 0x2a5   : > { %v751_v57 = vpop.xlane.xlu0 %750 }
 0x2a6   : > { %v762_v58 = vsub.f32 %v3070_v18, %v751_v57  ;;  %2379 = vpow2.f32 %v770_v45 }
 0x2a7   : > { %2381 = vpow2.f32 %v776_v34 }
 0x2a8   : > { %v774_v29 = vmul.f32 1.442695, %v762_v58 }
 0x2a9   : > { %v757_v33 = vpop.xlane.xlu1 %756  ;;  %v755_v32 = vpop.xlane.xlu0 %754 }
 0x2aa   : > { %2383 = vpow2.f32 %v774_v29  ;;  %v765_v30 = vsub.f32 %v3083_v48, %v757_v33  ;;  %v764_v37 = vsub.f32 %v3079_v47, %v755_v32 }
 0x2ac   : > { %v780_v60 = vmul.f32 1.442695, %v765_v30  ;;  %v778_v61 = vmul.f32 1.442695, %v764_v37 }
 0x2ad   : > { %v994_v0 = vpop.xlane.xlu0 %993 }
 0x2ae   : > { %2385 = vpow2.f32 %v780_v60  ;;  %v1009_v62 = vsub.f32 %v3103_v35, %v994_v0 }
 0x2af   : > { %v3154_v2 = vpop.eup %2375  ;;  %2387 = vpow2.f32 %v778_v61 }
 0x2b0   : > { %v1017_v18 = vmul.f32 1.442695, %v1009_v62  ;;  %784 = vadd.xlane.f32.xlu1 %v3154_v2  ;;  %v3159_v47 = vpop.eup %2377 }
 0x2b1   : > { %v996_v4 = vpop.xlane.xlu1 %995  ;;  %v998_v5 = vpop.xlane.xlu0 %997 }
 0x2b2   : > { %2389 = vpow2.f32 %v1017_v18  ;;  %v1010_v15 = vsub.f32 %v3119_v63, %v996_v4  ;;  %v1011_v48 = vsub.f32 %v3111_v59, %v998_v5 }
 0x2b3   : > { %v3161_v41 = vpop.eup %2379 }
 0x2b4   : > { %v1019_v16 = vmul.f32 1.442695, %v1010_v15  ;;  %v1021_v20 = vmul.f32 1.442695, %v1011_v48  ;;  %788 = vadd.xlane.f32.xlu1 %v3159_v47  ;;  %786 = vadd.xlane.f32.xlu0 %v3161_v41  ;;  %v3165_v21 = vpop.eup %2381 }
 0x2b5   : > { %v1000_v35 = vpop.xlane.xlu1 %999 }
 0x2b6   : > { %2391 = vpow2.f32 %v1019_v16  ;;  %v1012_v6 = vsub.f32 %v3126_v19, %v1000_v35 }
 0x2b7   : > { %v3168_v22 = vpop.eup %2383  ;;  %2393 = vpow2.f32 %v1021_v20 }
 0x2b8   : > { %v1023_v59 = vmul.f32 1.442695, %v1012_v6  ;;  %792 = vadd.xlane.f32.xlu1 %v3165_v21  ;;  %790 = vadd.xlane.f32.xlu0 %v3168_v22 }
 0x2b9   : > { %v1004_v63 = vpop.xlane.xlu1 %1003  ;;  %v1002_v23 = vpop.xlane.xlu0 %1001 }
 0x2ba   : > { %2395 = vpow2.f32 %v1023_v59  ;;  %v1014_v24 = vsub.f32 %v3132_v8, %v1004_v63  ;;  %v1013_v3 = vsub.f32 %v3130_v26, %v1002_v23 }
 0x2bb   : > { %v3174_v27 = vpop.eup %2385 }
 0x2bc   : > { %v3176_v25 = vpop.eup %2387  ;;  %v1027_v19 = vmul.f32 1.442695, %v1014_v24  ;;  %v1025_v28 = vmul.f32 1.442695, %v1013_v3  ;;  %796 = vadd.xlane.f32.xlu1 %v3174_v27 }
 0x2bd   : > { %794 = vadd.xlane.f32.xlu0 %v3176_v25  ;;  %v1008_v36 = vpop.xlane.xlu1 %1007  ;;  %v1006_v38 = vpop.xlane.xlu0 %1005 }
 0x2be   : > { %2397 = vpow2.f32 %v1027_v19  ;;  %v1016_v1 = vsub.f32 %v3138_v31, %v1008_v36  ;;  %v1015_v40 = vsub.f32 %v3136_v39, %v1006_v38 }
 0x2bf   : > { %v3182_v8 = vpop.eup %2389  ;;  %2399 = vpow2.f32 %v1025_v28 }
 0x2c0   : > { %v1031_v26 = vmul.f32 1.442695, %v1016_v1  ;;  %v1029_v42 = vmul.f32 1.442695, %v1015_v40 }
 0x2c1   : > { %1033 = vadd.xlane.f32.xlu0 %v3182_v8 }
 0x2c2   : > { %2401 = vpow2.f32 %v1031_v26 }
 0x2c3   : > { %v3185_v43 = vpop.eup %2391  ;;  %2403 = vpow2.f32 %v1029_v42 }
 0x2c4   : > { %v3187_v44 = vpop.eup %2393  ;;  %1035 = vadd.xlane.f32.xlu1 %v3185_v43 }
 0x2c5   : > { %1037 = vadd.xlane.f32.xlu0 %v3187_v44 }
 0x2c7   : > { %v3191_v31 = vpop.eup %2395 }
 0x2c8   : > { %1039 = vadd.xlane.f32.xlu1 %v3191_v31 }
 0x2cb   : > { %v3194_v39 = vpop.eup %2397 }
 0x2cc   : > { %v3196_v46 = vpop.eup %2399  ;;  %1043 = vadd.xlane.f32.xlu1 %v3194_v39 }
 0x2cd   : > { %1041 = vadd.xlane.f32.xlu0 %v3196_v46 }
 0x2cf   : > { %v3200_v17 = vpop.eup %2401 }
 0x2d0   : > { %v3202_v7 = vpop.eup %2403  ;;  %1047 = vadd.xlane.f32.xlu1 %v3200_v17 }
 0x2d1   : > { %1045 = vadd.xlane.f32.xlu0 %v3202_v7 }
 0x2d9   : > { %v3206_v11 = vpop.f32.mrf.mxu0 }
 0x2db   : > { %v3208_v49 = vpop.f32.mrf.mxu0 }
 0x2dd   : > { %v3210_v13 = vpop.f32.mrf.mxu0 }
 0x2de   : > { %v1427_v12 = vpack.c.bf16 %v3210_v13, %v3206_v11 }
 0x2df   : > { %v3212_v10 = vpop.f32.mrf.mxu0 }
 0x2e0   : > { %v1426_v9 = vpack.c.bf16 %v3212_v10, %v3208_v49 }
 0x2e1   : > { %v3218_v14 = vpop.f32.mrf.mxu0 }
 0x2e2   : > { %2230 = vmatprep.mubr.bf16.mxu1 %v1426_v9 }
 0x2e3   : > { %v3220_v51 = vpop.f32.mrf.mxu0  ;;  %2231 = vmatmul.mubr.bf16.vlgmr.msra.gmra.mxu1 %v1427_v12 }
 0x2e5   : > { %v3222_v52 = vpop.f32.mrf.mxu0 }
 0x2e6   : > { %v1429_v53 = vpack.c.bf16 %v3222_v52, %v3218_v14 }
 0x2e7   : > { %v3224_v54 = vpop.f32.mrf.mxu0 }
 0x2e8   : > { %v1428_v55 = vpack.c.bf16 %v3224_v54, %v3220_v51 }
 0x2ea   : > { %2234 = vmatprep.mubr.bf16.mxu1 %v1428_v55 }
 0x2eb   : > { %2235 = vmatmul.mubr.bf16.gmra.mxu1 %v1429_v53 }
 0x2fb   : > { %v783_v56 = vpop.xlane.xlu0 %782 }
 0x2fc   : > { %2405 = vrcp.f32 %v783_v56 }
 0x309   : > { %v2406_v33 = vpop.eup %2405 }
 0x30a   : > { %v806_v60 = vmul.f32 %v2406_v33, %v3143_v50 }
 0x339   : > { %v785_v45 = vpop.xlane.xlu1 %784 }
 0x33a   : > { %2407 = vrcp.f32 %v785_v45 }
 0x33d   : > { %v789_v34 = vpop.xlane.xlu1 %788  ;;  %v787_v57 = vpop.xlane.xlu0 %786 }
 0x33e   : > { %2409 = vrcp.f32 %v789_v34 }
 0x33f   : > { %2411 = vrcp.f32 %v787_v57 }
 0x341   : > { %v793_v58 = vpop.xlane.xlu1 %792  ;;  %v791_v29 = vpop.xlane.xlu0 %790 }
 0x342   : > { %2413 = vrcp.f32 %v793_v58 }
 0x343   : > { %2415 = vrcp.f32 %v791_v29 }
 0x345   : > { %v797_v32 = vpop.xlane.xlu1 %796 }
 0x346   : > { %2417 = vrcp.f32 %v797_v32  ;;  %v795_v30 = vpop.xlane.xlu0 %794 }
 0x347   : > { %v2408_v37 = vpop.eup %2407  ;;  %2419 = vrcp.f32 %v795_v30 }
 0x348   : > { %v807_v61 = vmul.f32 %v2408_v37, %v3154_v2 }
 0x34a   : > { %v2094_v0 = vpack.c.bf16 %v807_v61, %v806_v60  ;;  %v1034_v62 = vpop.xlane.xlu0 %1033 }
 0x34b   : > { %v2410_v18 = vpop.eup %2409  ;;  %2421 = vrcp.f32 %v1034_v62 }
 0x34c   : > { %v2412_v4 = vpop.eup %2411  ;;  %2134 = vst [vmem:[#allocation2 + $0x20] sm:$0xff] %v2094_v0   ;;  %v809_v5 = vmul.f32 %v2410_v18, %v3159_v47 }
 0x34d   : > { %v808_v15 = vmul.f32 %v2412_v4, %v3161_v41  ;;  %v1036_v48 = vpop.xlane.xlu1 %1035 }
 0x34e   : > { %2423 = vrcp.f32 %v1036_v48  ;;  %v1038_v16 = vpop.xlane.xlu0 %1037 }
 0x34f   : > { %v2414_v20 = vpop.eup %2413  ;;  %v2099_v35 = vpack.c.bf16 %v809_v5, %v808_v15  ;;  %2425 = vrcp.f32 %v1038_v16 }
 0x350   : > { %v2416_v6 = vpop.eup %2415  ;;  %v811_v50 = vmul.f32 %v2414_v20, %v3165_v21 }
 0x351   : > { %2135 = vst [vmem:[#allocation2 + $0x28] sm:$0xff] %v2099_v35   ;;  %v810_v2 = vmul.f32 %v2416_v6, %v3168_v22  ;;  %v1040_v59 = vpop.xlane.xlu1 %1039 }
 0x352   : > { %2427 = vrcp.f32 %v1040_v59 }
 0x353   : > { %v2418_v63 = vpop.eup %2417  ;;  %v2104_v23 = vpack.c.bf16 %v811_v50, %v810_v2  ;;  %v2333_v47 = vld [vmem:[#allocation2 + $0x20] sm:$0xff]  }
 0x354   : > { %v2420_v24 = vpop.eup %2419  ;;  %v813_v41 = vmul.f32 %v2418_v63, %v3174_v27  ;;  %2198 = vmatprep.mubr.bf16.mxu0 %v2333_v47 }
 0x355   : > { %2136 = vst [vmem:[#allocation2 + $0x30] sm:$0xff] %v2104_v23   ;;  %v812_v3 = vmul.f32 %v2420_v24, %v3176_v25  ;;  %v1044_v19 = vpop.xlane.xlu1 %1043 }
 0x356   : > { %2429 = vrcp.f32 %v1044_v19  ;;  %v1042_v28 = vpop.xlane.xlu0 %1041 }
 0x357   : > { %v2109_v21 = vpack.c.bf16 %v813_v41, %v812_v3  ;;  %2431 = vrcp.f32 %v1042_v28 }
 0x358   : > { %v2334_v36 = vld [vmem:[#allocation2 + $0x28] sm:$0xff]   ;;  %v2422_v38 = vpop.eup %2421 }
 0x359   : > { %2137 = vst [vmem:[#allocation2 + $0x38] sm:$0xff] %v2109_v21   ;;  %v1048_v22 = vpop.xlane.xlu1 %1047  ;;  %2199 = vmatmul.mubr.bf16.gmra.mxu0 %v2334_v36  ;;  %v1057_v27 = vmul.f32 %v2422_v38, %v3182_v8 }
 0x35a   : > { %2433 = vrcp.f32 %v1048_v22  ;;  %v1046_v1 = vpop.xlane.xlu0 %1045 }
 0x35b   : > { %v2424_v40 = vpop.eup %2423  ;;  %2435 = vrcp.f32 %v1046_v1 }
 0x35c   : > { %v1058_v26 = vmul.f32 %v2424_v40, %v3185_v43  ;;  %v2335_v25 = vld [vmem:[#allocation2 + $0x30] sm:$0xff]   ;;  %v2426_v42 = vpop.eup %2425 }
 0x35d   : > { %2202 = vmatprep.mubr.bf16.mxu0 %v2335_v25  ;;  %v1059_v55 = vmul.f32 %v2426_v42, %v3187_v44 }
 0x35e   : > { %v2114_v9 = vpack.c.bf16 %v1058_v26, %v1057_v27 }
 0x35f   : > { %v2428_v12 = vpop.eup %2427 }
 0x360   : > { %2138 = vst [vmem:[#allocation2 + $0x40] sm:$0xff] %v2114_v9   ;;  %v1060_v53 = vmul.f32 %v2428_v12, %v3191_v31  ;;  %v2336_v56 = vld [vmem:[#allocation2 + $0x38] sm:$0xff]  }
 0x361   : > { %2203 = vmatmul.mubr.bf16.gmra.mxu0 %v2336_v56 }
 0x362   : > { %v2119_v45 = vpack.c.bf16 %v1060_v53, %v1059_v55 }
 0x363   : > { %v2430_v34 = vpop.eup %2429 }
 0x364   : > { %v2432_v57 = vpop.eup %2431  ;;  %2139 = vst [vmem:[#allocation2 + $0x48] sm:$0xff] %v2119_v45   ;;  %v1062_v8 = vmul.f32 %v2430_v34, %v3194_v39 }
 0x365   : > { %v1061_v43 = vmul.f32 %v2432_v57, %v3196_v46 }
 0x367   : > { %v2434_v58 = vpop.eup %2433  ;;  %v2124_v29 = vpack.c.bf16 %v1062_v8, %v1061_v43  ;;  %v2337_v33 = vld [vmem:[#allocation2 + $0x40] sm:$0xff]  }
 0x368   : > { %v2436_v32 = vpop.eup %2435  ;;  %v1064_v30 = vmul.f32 %v2434_v58, %v3200_v17  ;;  %2206 = vmatprep.mubr.bf16.mxu0 %v2337_v33 }
 0x369   : > { %2140 = vst [vmem:[#allocation2 + $0x50] sm:$0xff] %v2124_v29   ;;  %v1063_v44 = vmul.f32 %v2436_v32, %v3202_v7 }
 0x36b   : > { %v2129_v31 = vpack.c.bf16 %v1064_v30, %v1063_v44  ;;  %v2338_v37 = vld [vmem:[#allocation2 + $0x48] sm:$0xff]  }
 0x36c   : > { %2207 = vmatmul.mubr.bf16.gmra.mxu0 %v2338_v37 }
 0x36d   : > { %2141 = vst [vmem:[#allocation2 + $0x58] sm:$0xff] %v2129_v31  }
 0x370   : > { %v2339_v60 = vld [vmem:[#allocation2 + $0x50] sm:$0xff]  }
 0x371   : > { %2210 = vmatprep.mubr.bf16.mxu0 %v2339_v60 }
 0x374   : > { %v2340_v61 = vld [vmem:[#allocation2 + $0x58] sm:$0xff]  }
 0x375   : > { %2211 = vmatmul.mubr.bf16.gmra.mxu0 %v2340_v61 }
 0x3a3   : > { %v2232_v39 = vpop.f32.mrf.mxu1 }
 0x3a4   : > { %v1561_v46 = vmul.f32 %v2232_v39, %v3206_v11 }
 0x3a5   : > { %v1528_v0 = vpop.f32.mrf.mxu1 }
 0x3a6   : > { %1571 = vadd.xlane.f32.xlu0 %v1561_v46  ;;  %v1559_v23 = vmul.f32 %v1528_v0, %v3208_v49 }
 0x3a7   : > { %v2233_v62 = vpop.f32.mrf.mxu1 }
 0x3a8   : > { %v1562_v17 = vmul.f32 %v2233_v62, %v3210_v13 }
 0x3a9   : > { %v1531_v24 = vpop.f32.mrf.mxu1 }
 0x3aa   : > { %1573 = vadd.xlane.f32.xlu1 %v1562_v17  ;;  %v1560_v3 = vmul.f32 %v1531_v24, %v3212_v10 }
 0x3ab   : > { %v2236_v19 = vpop.f32.mrf.mxu1 }
 0x3ac   : > { %v1565_v22 = vmul.f32 %v2236_v19, %v3218_v14 }
 0x3ad   : > { %v1544_v36 = vpop.f32.mrf.mxu1 }
 0x3ae   : > { %v1563_v42 = vmul.f32 %v1544_v36, %v3220_v51 }
 0x3af   : > { %v2237_v40 = vpop.f32.mrf.mxu1 }
 0x3b0   : > { %v1566_v26 = vmul.f32 %v2237_v40, %v3222_v52 }
 0x3b1   : > { %v1547_v12 = vpop.f32.mrf.mxu1 }
 0x3b2   : > { %v1564_v56 = vmul.f32 %v1547_v12, %v3224_v54 }
 0x419   : > { %v3248_v18 = vpop.f32.mrf.mxu0 }
 0x41a   : > { %v1601_v7 = vmul.f32 %v2232_v39, %v3248_v18 }
 0x41b   : > { %v3251_v4 = vpop.f32.mrf.mxu0 }
 0x41c   : > { %1611 = vadd.xlane.f32.xlu0 %v1601_v7  ;;  %v1599_v41 = vmul.f32 %v1528_v0, %v3251_v4 }
 0x41d   : > { %v3253_v5 = vpop.f32.mrf.mxu0 }
 0x41e   : > { %v1602_v15 = vmul.f32 %v2233_v62, %v3253_v5 }
 0x41f   : > { %v3256_v48 = vpop.f32.mrf.mxu0 }
 0x420   : > { %1613 = vadd.xlane.f32.xlu1 %v1602_v15  ;;  %v1600_v21 = vmul.f32 %v1531_v24, %v3256_v48 }
 0x421   : > { %v3258_v16 = vpop.f32.mrf.mxu0 }
 0x422   : > { %v1605_v27 = vmul.f32 %v2236_v19, %v3258_v16 }
 0x423   : > { %v3260_v20 = vpop.f32.mrf.mxu0 }
 0x424   : > { %v1603_v53 = vmul.f32 %v1544_v36, %v3260_v20 }
 0x425   : > { %v3262_v35 = vpop.f32.mrf.mxu0 }
 0x426   : > { %v1606_v9 = vmul.f32 %v2237_v40, %v3262_v35 }
 0x427   : > { %v3264_v6 = vpop.f32.mrf.mxu0 }
 0x428   : > { %v1604_v34 = vmul.f32 %v1547_v12, %v3264_v6 }
 0x42c   : > { %v3266_v50 = vpop.f32.mrf.mxu0 }
 0x42d   : > { %v1641_v2 = vmul.f32 %v2232_v39, %v3266_v50 }
 0x42e   : > { %v3269_v59 = vpop.f32.mrf.mxu0 }
 0x42f   : > { %1651 = vadd.xlane.f32.xlu0 %v1641_v2  ;;  %v1639_v28 = vmul.f32 %v1528_v0, %v3269_v59  ;;  %v1572_v33 = vpop.xlane.xlu0 %1571 }
 0x430   : > { %v3271_v63 = vpop.f32.mrf.mxu0  ;;  %v1585_v37 = vmul.f32 0.17677669, %v1572_v33 }
 0x431   : > { %v1642_v47 = vmul.f32 %v2233_v62, %v3271_v63 }
 0x432   : > { %v3279_v38 = vpop.f32.mrf.mxu0 }
 0x433   : > { %1567 = vadd.xlane.f32.xlu0 %v1559_v23  ;;  %1653 = vadd.xlane.f32.xlu1 %v1642_v47  ;;  %v1640_v1 = vmul.f32 %v1531_v24, %v3279_v38  ;;  %v1574_v32 = vpop.xlane.xlu1 %1573 }
 0x434   : > { %v1586_v0 = vmul.f32 0.17677669, %v1574_v32 }
 0x435   : > { %v3285_v25 = vpop.f32.mrf.mxu0 }
 0x436   : > { %v1645_v58 = vmul.f32 %v2236_v19, %v3285_v25 }
 0x437   : > { %1607 = vadd.xlane.f32.xlu0 %v1599_v41  ;;  %1569 = vadd.xlane.f32.xlu1 %v1560_v3  ;;  %v3289_v55 = vpop.f32.mrf.mxu0 }
 0x438   : > { %v1643_v57 = vmul.f32 %v1544_v36, %v3289_v55 }
 0x439   : > { %v3293_v45 = vpop.f32.mrf.mxu0 }
 0x43a   : > { %v1646_v29 = vmul.f32 %v2237_v40, %v3293_v45 }
 0x43b   : > { %1647 = vadd.xlane.f32.xlu0 %v1639_v28  ;;  %1609 = vadd.xlane.f32.xlu1 %v1600_v21  ;;  %v3297_v8 = vpop.f32.mrf.mxu0 }
 0x43c   : > { %v1644_v43 = vmul.f32 %v1547_v12, %v3297_v8 }
 0x43f   : > { %1579 = vadd.xlane.f32.xlu0 %v1565_v22  ;;  %1649 = vadd.xlane.f32.xlu1 %v1640_v1 }
 0x443   : > { %1619 = vadd.xlane.f32.xlu0 %v1605_v27  ;;  %1581 = vadd.xlane.f32.xlu1 %v1566_v26 }
 0x447   : > { %1575 = vadd.xlane.f32.xlu0 %v1563_v42  ;;  %1621 = vadd.xlane.f32.xlu1 %v1606_v9 }
 0x44b   : > { %1615 = vadd.xlane.f32.xlu0 %v1603_v53  ;;  %1577 = vadd.xlane.f32.xlu1 %v1564_v56 }
 0x44f   : > { %1617 = vadd.xlane.f32.xlu1 %v1604_v34  ;;  %1655 = vadd.xlane.f32.xlu0 %v1643_v57 }
 0x453   : > { %1659 = vadd.xlane.f32.xlu0 %v1645_v58  ;;  %1657 = vadd.xlane.f32.xlu1 %v1644_v43 }
 0x457   : > { %1661 = vadd.xlane.f32.xlu1 %v1646_v29 }
 0x4a5   : > { %v1612_v30 = vpop.xlane.xlu0 %1611 }
 0x4a6   : > { %v1625_v44 = vmul.f32 0.17677669, %v1612_v30 }
 0x4a8   : > { %v1673_v39 = vmax.f32 %v1585_v37, %v1625_v44 }
 0x4a9   : > { %v1614_v31 = vpop.xlane.xlu1 %1613 }
 0x4aa   : > { %v1626_v60 = vmul.f32 0.17677669, %v1614_v31 }
 0x4ac   : > { %v1674_v17 = vmax.f32 %v1586_v0, %v1626_v60 }
 0x4b8   : > { %v1652_v61 = vpop.xlane.xlu0 %1651 }
 0x4b9   : > { %v1665_v46 = vmul.f32 0.17677669, %v1652_v61 }
 0x4bb   : > { %v1681_v62 = vmax.f32 %v1673_v39, %v1665_v46 }
 0x4bc   : > { %v1654_v7 = vpop.xlane.xlu1 %1653  ;;  %v1568_v15 = vpop.xlane.xlu0 %1567 }
 0x4bd   : > { %v1689_v2 = vsub.f32 %v1585_v37, %v1681_v62  ;;  %v1713_v23 = vsub.f32 %v1625_v44, %v1681_v62  ;;  %v1737_v47 = vsub.f32 %v1665_v46, %v1681_v62  ;;  %v1666_v24 = vmul.f32 0.17677669, %v1654_v7 }
 0x4be   : > { %v1583_v9 = vmul.f32 0.17677669, %v1568_v15 }
 0x4bf   : > { %v1699_v41 = vmul.f32 1.442695, %v1689_v2  ;;  %v1723_v3 = vmul.f32 1.442695, %v1713_v23  ;;  %v1682_v19 = vmax.f32 %v1674_v17, %v1666_v24  ;;  %v1747_v28 = vmul.f32 1.442695, %v1737_v47 }
 0x4c0   : > { %v1570_v21 = vpop.xlane.xlu1 %1569  ;;  %v1608_v36 = vpop.xlane.xlu0 %1607 }
 0x4c1   : > { %2437 = vpow2.f32 %v1699_v41  ;;  %v1690_v22 = vsub.f32 %v1586_v0, %v1682_v19  ;;  %v1714_v1 = vsub.f32 %v1626_v60, %v1682_v19  ;;  %v1738_v40 = vsub.f32 %v1666_v24, %v1682_v19 }
 0x4c2   : > { %2439 = vpow2.f32 %v1723_v3  ;;  %v1623_v27 = vmul.f32 0.17677669, %v1608_v36  ;;  %v1584_v58 = vmul.f32 0.17677669, %v1570_v21 }
 0x4c3   : > { %v1701_v26 = vmul.f32 1.442695, %v1690_v22  ;;  %v1725_v42 = vmul.f32 1.442695, %v1714_v1  ;;  %2441 = vpow2.f32 %v1747_v28  ;;  %v1749_v12 = vmul.f32 1.442695, %v1738_v40 }
 0x4c4   : > { %v1610_v53 = vpop.xlane.xlu1 %1609  ;;  %v1648_v56 = vpop.xlane.xlu0 %1647  ;;  %v1671_v34 = vmax.f32 %v1583_v9, %v1623_v27 }
 0x4c5   : > { %2443 = vpow2.f32 %v1701_v26  ;;  %v1624_v57 = vmul.f32 0.17677669, %v1610_v53  ;;  %v1663_v43 = vmul.f32 0.17677669, %v1648_v56 }
 0x4c6   : > { %2445 = vpow2.f32 %v1725_v42 }
 0x4c7   : > { %v1679_v29 = vmax.f32 %v1671_v34, %v1663_v43  ;;  %2447 = vpow2.f32 %v1749_v12  ;;  %v1672_v33 = vmax.f32 %v1584_v58, %v1624_v57 }
 0x4c8   : > { %v1650_v32 = vpop.xlane.xlu1 %1649  ;;  %v1580_v30 = vpop.xlane.xlu0 %1579 }
 0x4c9   : > { %v1687_v44 = vsub.f32 %v1583_v9, %v1679_v29  ;;  %v1711_v31 = vsub.f32 %v1623_v27, %v1679_v29  ;;  %v1735_v37 = vsub.f32 %v1663_v43, %v1679_v29  ;;  %v1664_v60 = vmul.f32 0.17677669, %v1650_v32 }
 0x4cb   : > { %v1695_v61 = vmul.f32 1.442695, %v1687_v44  ;;  %v1719_v39 = vmul.f32 1.442695, %v1711_v31  ;;  %v1680_v46 = vmax.f32 %v1672_v33, %v1664_v60  ;;  %v1743_v0 = vmul.f32 1.442695, %v1735_v37 }
 0x4cc   : > { %v3302_v62 = vpop.xlane.xlu1 %1581  ;;  %v1620_v17 = vpop.xlane.xlu0 %1619 }
 0x4cd   : > { %2449 = vpow2.f32 %v1695_v61  ;;  %v1688_v7 = vsub.f32 %v1584_v58, %v1680_v46  ;;  %v1712_v15 = vsub.f32 %v1624_v57, %v1680_v46  ;;  %v1736_v2 = vsub.f32 %v1664_v60, %v1680_v46 }
 0x4ce   : > { %v3304_v23 = vpop.eup %2437  ;;  %2451 = vpow2.f32 %v1719_v39  ;;  %v1629_v32 = vmul.f32 0.17677669, %v1620_v17  ;;  %v1589_v61 = vmul.f32 0.17677669, %v1580_v30 }
 0x4cf   : > { %v3306_v47 = vpop.eup %2439  ;;  %v1697_v24 = vmul.f32 1.442695, %v1688_v7  ;;  %v1721_v41 = vmul.f32 1.442695, %v1712_v15  ;;  %v1745_v3 = vmul.f32 1.442695, %v1736_v2  ;;  %2453 = vpow2.f32 %v1743_v0 }
 0x4d0   : > { %v1761_v19 = vadd.f32 %v3306_v47, %v3304_v23  ;;  %v1622_v28 = vpop.xlane.xlu1 %1621  ;;  %v1576_v21 = vpop.xlane.xlu0 %1575 }
 0x4d1   : > { %v2442_v36 = vpop.eup %2441  ;;  %2455 = vpow2.f32 %v1697_v24  ;;  %v1587_v56 = vmul.f32 0.17677669, %v1576_v21 }
 0x4d2   : > { %v3310_v22 = vpop.eup %2443  ;;  %v1769_v1 = vadd.f32 %v2442_v36, %v1761_v19  ;;  %2457 = vpow2.f32 %v1721_v41  ;;  %v1677_v19 = vmax.f32 %v1589_v61, %v1629_v32 }
 0x4d3   : > { %v3312_v40 = vpop.eup %2445  ;;  %2459 = vpow2.f32 %v1745_v3 }
 0x4d4   : > { %2461 = vrcp.f32 %v1769_v1  ;;  %v1762_v27 = vadd.f32 %v3312_v40, %v3310_v22  ;;  %v1578_v26 = vpop.xlane.xlu1 %1577  ;;  %v1616_v42 = vpop.xlane.xlu0 %1615 }
 0x4d5   : > { %v3316_v9 = vpop.eup %2447  ;;  %v1627_v12 = vmul.f32 0.17677669, %v1616_v42  ;;  %v1588_v44 = vmul.f32 0.17677669, %v1578_v26 }
 0x4d6   : > { %v1770_v53 = vadd.f32 %v3316_v9, %v1762_v27  ;;  %v3332_v27 = vmul.f32 0.17677669, %v1622_v28 }
 0x4d7   : > { %v1675_v43 = vmax.f32 %v1587_v56, %v1627_v12 }
 0x4d8   : > { %2463 = vrcp.f32 %v1770_v53  ;;  %v1618_v34 = vpop.xlane.xlu1 %1617  ;;  %v1656_v57 = vpop.xlane.xlu0 %1655 }
 0x4d9   : > { %v1628_v58 = vmul.f32 0.17677669, %v1618_v34  ;;  %v1667_v29 = vmul.f32 0.17677669, %v1656_v57 }
 0x4da   : > { %v3319_v33 = vpop.eup %2449 }
 0x4db   : > { %v3321_v31 = vpop.eup %2451  ;;  %v1683_v37 = vmax.f32 %v1675_v43, %v1667_v29  ;;  %v1676_v39 = vmax.f32 %v1588_v44, %v1628_v58 }
 0x4dc   : > { %v1759_v60 = vadd.f32 %v3321_v31, %v3319_v33  ;;  %v1658_v46 = vpop.xlane.xlu1 %1657  ;;  %v1660_v0 = vpop.xlane.xlu0 %1659 }
 0x4dd   : > { %v3325_v7 = vpop.eup %2453  ;;  %v1691_v15 = vsub.f32 %v1587_v56, %v1683_v37  ;;  %v1715_v2 = vsub.f32 %v1627_v12, %v1683_v37  ;;  %v1739_v24 = vsub.f32 %v1667_v29, %v1683_v37  ;;  %v1668_v41 = vmul.f32 0.17677669, %v1658_v46 }
 0x4de   : > { %v3327_v3 = vpop.eup %2455  ;;  %v1767_v17 = vadd.f32 %v3325_v7, %v1759_v60  ;;  %v1669_v21 = vmul.f32 0.17677669, %v1660_v0 }
 0x4df   : > { %v3330_v1 = vpop.eup %2457  ;;  %v1703_v30 = vmul.f32 1.442695, %v1691_v15  ;;  %v1727_v26 = vmul.f32 1.442695, %v1715_v2  ;;  %v1684_v42 = vmax.f32 %v1676_v39, %v1668_v41  ;;  %v1751_v56 = vmul.f32 1.442695, %v1739_v24 }
 0x4e0   : > { %v3334_v53 = vpop.eup %2459  ;;  %2465 = vrcp.f32 %v1767_v17  ;;  %v1760_v12 = vadd.f32 %v3330_v1, %v3327_v3  ;;  %v1685_v34 = vmax.f32 %v1677_v19, %v1669_v21 }
 0x4e1   : > { %v2462_v57 = vpop.eup %2461  ;;  %2467 = vpow2.f32 %v1703_v30  ;;  %v1692_v43 = vsub.f32 %v1588_v44, %v1684_v42  ;;  %v1716_v29 = vsub.f32 %v1628_v58, %v1684_v42  ;;  %v1740_v37 = vsub.f32 %v1668_v41, %v1684_v42  ;;  %v1662_v42 = vpop.xlane.xlu1 %1661 }
 0x4e2   : > { %v1785_v28 = vmul.f32 %v2462_v57, %v3304_v23  ;;  %v1801_v60 = vmul.f32 %v2462_v57, %v3306_v47  ;;  %v1825_v46 = vmul.f32 %v2462_v57, %v2442_v36  ;;  %v1768_v39 = vadd.f32 %v3334_v53, %v1760_v12 }
 0x4e3   : > { %2469 = vpow2.f32 %v1727_v26  ;;  %v1705_v0 = vmul.f32 1.442695, %v1692_v43  ;;  %v1729_v15 = vmul.f32 1.442695, %v1716_v29  ;;  %v1753_v2 = vmul.f32 1.442695, %v1740_v37 }
 0x4e4   : > { %v1793_v24 = vmul.f32 %v3206_v11, %v1785_v28  ;;  %v1809_v17 = vmul.f32 %v3248_v18, %v1801_v60  ;;  %v1833_v44 = vmul.f32 %v3266_v50, %v1825_v46  ;;  %2471 = vrcp.f32 %v1768_v39 }
 0x4e5   : > { %v2464_v58 = vpop.eup %2463  ;;  %2473 = vpow2.f32 %v1751_v56  ;;  %v1693_v23 = vsub.f32 %v1589_v61, %v1685_v34  ;;  %v1717_v41 = vsub.f32 %v1629_v32, %v1685_v34  ;;  %v1741_v47 = vsub.f32 %v1669_v21, %v1685_v34 }
 0x4e6   : > { %v1817_v36 = vadd.f32 %v1809_v17, %v1793_v24  ;;  %v1786_v19 = vmul.f32 %v2464_v58, %v3310_v22  ;;  %v1802_v30 = vmul.f32 %v2464_v58, %v3312_v40  ;;  %v1826_v26 = vmul.f32 %v2464_v58, %v3316_v9 }
 0x4e7   : > { %v1590_v11 = vmul.f32 0.17677669, %v3302_v62  ;;  %2475 = vpow2.f32 %v1705_v0  ;;  %v1707_v18 = vmul.f32 1.442695, %v1693_v23  ;;  %v1731_v61 = vmul.f32 1.442695, %v1717_v41 }
 0x4e8   : > { %v1841_v12 = vadd.f32 %v1833_v44, %v1817_v36  ;;  %v1794_v50 = vmul.f32 %v3210_v13, %v1786_v19  ;;  %v1810_v56 = vmul.f32 %v3253_v5, %v1802_v30  ;;  %2477 = vpow2.f32 %v1729_v15 }
 0x4e9   : > { %v1678_v32 = vmax.f32 %v1590_v11, %v3332_v27  ;;  %v1670_v21 = vmul.f32 0.17677669, %v1662_v42  ;;  %v1834_v62 = vmul.f32 %v3271_v63, %v1826_v26  ;;  %2479 = vpow2.f32 %v1753_v2 }
 0x4ea   : > { %1849 = vst [vmem:[%s3352_s8 + $0x10] sm:$0xff] %v1841_v12  ;;  %v1818_v22 = vadd.f32 %v1810_v56, %v1794_v50  ;;  %v1755_v40 = vmul.f32 1.442695, %v1741_v47  ;;  %2481 = vpow2.f32 %v1707_v18 }
 0x4eb   : > { %v1686_v9 = vmax.f32 %v1678_v32, %v1670_v21  ;;  %2483 = vpow2.f32 %v1731_v61 }
 0x4ec   : > { %v1842_v13 = vadd.f32 %v1834_v62, %v1818_v22  ;;  %2485 = vpow2.f32 %v1755_v40 }
 0x4ed   : > { %v2466_v5 = vpop.eup %2465  ;;  %v1694_v34 = vsub.f32 %v1590_v11, %v1686_v9  ;;  %v1718_v57 = vsub.f32 %v3332_v27, %v1686_v9  ;;  %v1742_v43 = vsub.f32 %v1670_v21, %v1686_v9 }
 0x4ee   : > { %v2468_v29 = vpop.eup %2467  ;;  %1850 = vst [vmem:[%s3352_s8 + $0x18] sm:$0xff] %v1842_v13  ;;  %v1783_v37 = vmul.f32 %v2466_v5, %v3319_v33  ;;  %v1799_v28 = vmul.f32 %v2466_v5, %v3321_v31  ;;  %v1823_v60 = vmul.f32 %v2466_v5, %v3325_v7 }
 0x4ef   : > { %v1709_v63 = vmul.f32 1.442695, %v1694_v34  ;;  %v1733_v46 = vmul.f32 1.442695, %v1718_v57  ;;  %v1757_v17 = vmul.f32 1.442695, %v1742_v43 }
 0x4f0   : > { %v2470_v39 = vpop.eup %2469  ;;  %v1791_v0 = vmul.f32 %v1783_v37, %v3208_v49  ;;  %v1807_v15 = vmul.f32 %v1799_v28, %v3251_v4  ;;  %v1831_v27 = vmul.f32 %v1823_v60, %v3269_v59 }
 0x4f1   : > { %v2472_v2 = vpop.eup %2471  ;;  %v1763_v24 = vadd.f32 %v2470_v39, %v2468_v29  ;;  %2487 = vpow2.f32 %v1709_v63 }
 0x4f2   : > { %v2474_v33 = vpop.eup %2473  ;;  %v1815_v44 = vadd.f32 %v1807_v15, %v1791_v0  ;;  %v1784_v31 = vmul.f32 %v2472_v2, %v3327_v3  ;;  %v1800_v7 = vmul.f32 %v2472_v2, %v3330_v1  ;;  %v1824_v58 = vmul.f32 %v2472_v2, %v3334_v53 }
 0x4f3   : > { %v1771_v23 = vadd.f32 %v2474_v33, %v1763_v24  ;;  %2489 = vpow2.f32 %v1733_v46 }
 0x4f4   : > { %v2476_v49 = vpop.eup %2475  ;;  %v1839_v4 = vadd.f32 %v1831_v27, %v1815_v44  ;;  %v1792_v41 = vmul.f32 %v1784_v31, %v3212_v10  ;;  %v1808_v59 = vmul.f32 %v1800_v7, %v3256_v48  ;;  %v1832_v19 = vmul.f32 %v1824_v58, %v3279_v38 }
 0x4f5   : > { %2491 = vrcp.f32 %v1771_v23  ;;  %v2478_v47 = vpop.eup %2477 }
 0x4f6   : > { %1847 = vst [vmem:[%s3352_s8] sm:$0xff] %v1839_v4  ;;  %v1816_v36 = vadd.f32 %v1808_v59, %v1792_v41  ;;  %2493 = vpow2.f32 %v1757_v17  ;;  %v2480_v3 = vpop.eup %2479  ;;  %v1764_v1 = vadd.f32 %v2478_v47, %v2476_v49 }
 0x4f7   : > { %v2482_v30 = vpop.eup %2481 }
 0x4f8   : > { %v1840_v53 = vadd.f32 %v1832_v19, %v1816_v36  ;;  %v2484_v26 = vpop.eup %2483  ;;  %v1772_v42 = vadd.f32 %v2480_v3, %v1764_v1 }
 0x4f9   : > { %v1765_v11 = vadd.f32 %v2484_v26, %v2482_v30  ;;  %v2486_v18 = vpop.eup %2485 }
 0x4fa   : > { %1848 = vst [vmem:[%s3352_s8 + $0x8] sm:$0xff] %v1840_v53  ;;  %2495 = vrcp.f32 %v1772_v42 }
 0x4fb   : > { %v1773_v10 = vadd.f32 %v2486_v18, %v1765_v11 }
 0x4fd   : > { %2497 = vrcp.f32 %v1773_v10 }
 0x4fe   : > { %v2488_v12 = vpop.eup %2487 }
 0x500   : > { %v2490_v48 = vpop.eup %2489 }
 0x501   : > { %v1766_v50 = vadd.f32 %v2490_v48, %v2488_v12 }
 0x502   : > { %v2492_v56 = vpop.eup %2491 }
 0x503   : > { %v2494_v61 = vpop.eup %2493  ;;  %v1787_v38 = vmul.f32 %v2492_v56, %v2468_v29  ;;  %v1803_v32 = vmul.f32 %v2492_v56, %v2470_v39  ;;  %v1827_v21 = vmul.f32 %v2492_v56, %v2474_v33 }
 0x504   : > { %v1774_v22 = vadd.f32 %v2494_v61, %v1766_v50 }
 0x505   : > { %v1795_v62 = vmul.f32 %v1787_v38, %v3220_v51  ;;  %v1811_v40 = vmul.f32 %v1803_v32, %v3260_v20  ;;  %v1835_v13 = vmul.f32 %v1827_v21, %v3289_v55 }
 0x506   : > { %2499 = vrcp.f32 %v1774_v22 }
 0x507   : > { %v1819_v9 = vadd.f32 %v1811_v40, %v1795_v62  ;;  %v2496_v5 = vpop.eup %2495 }
 0x508   : > { %v1788_v57 = vmul.f32 %v2496_v5, %v2476_v49  ;;  %v1804_v43 = vmul.f32 %v2496_v5, %v2478_v47  ;;  %v1828_v37 = vmul.f32 %v2496_v5, %v2480_v3 }
 0x509   : > { %v1843_v34 = vadd.f32 %v1835_v13, %v1819_v9 }
 0x50a   : > { %v2498_v28 = vpop.eup %2497  ;;  %v1796_v29 = vmul.f32 %v1788_v57, %v3224_v54  ;;  %v1812_v60 = vmul.f32 %v1804_v43, %v3264_v6  ;;  %v1836_v55 = vmul.f32 %v1828_v37, %v3297_v8 }
 0x50b   : > { %1851 = vst [vmem:[%s3352_s8 + $0x20] sm:$0xff] %v1843_v34  ;;  %v1789_v51 = vmul.f32 %v2498_v28, %v2482_v30  ;;  %v1805_v63 = vmul.f32 %v2498_v28, %v2484_v26  ;;  %v1829_v20 = vmul.f32 %v2498_v28, %v2486_v18 }
 0x50c   : > { %v1820_v46 = vadd.f32 %v1812_v60, %v1796_v29 }
 0x50d   : > { %v1797_v39 = vmul.f32 %v3218_v14, %v1789_v51  ;;  %v1813_v0 = vmul.f32 %v3258_v16, %v1805_v63  ;;  %v1837_v27 = vmul.f32 %v3285_v25, %v1829_v20 }
 0x50e   : > { %v1844_v15 = vadd.f32 %v1836_v55, %v1820_v46 }
 0x50f   : > { %v1821_v2 = vadd.f32 %v1813_v0, %v1797_v39 }
 0x510   : > { %1852 = vst [vmem:[%s3352_s8 + $0x28] sm:$0xff] %v1844_v15 }
 0x511   : > { %v1845_v54 = vadd.f32 %v1837_v27, %v1821_v2 }
 0x513   : > { %v2500_v6 = vpop.eup %2499  ;;  %1853 = vst [vmem:[%s3352_s8 + $0x30] sm:$0xff] %v1845_v54 }
 0x514   : > { %v1790_v24 = vmul.f32 %v2500_v6, %v2488_v12  ;;  %v1806_v17 = vmul.f32 %v2500_v6, %v2490_v48  ;;  %v1830_v33 = vmul.f32 %v2500_v6, %v2494_v61 }
 0x516   : > { %v1798_v8 = vmul.f32 %v3222_v52, %v1790_v24  ;;  %v1814_v14 = vmul.f32 %v3262_v35, %v1806_v17  ;;  %v1838_v44 = vmul.f32 %v3293_v45, %v1830_v33 }
 0x518   : > { %v1822_v16 = vadd.f32 %v1814_v14, %v1798_v8 }
 0x51a   : > { %v1846_v25 = vadd.f32 %v1838_v44, %v1822_v16 }
 0x51c   : > { %1854 = vst [vmem:[%s3352_s8 + $0x38] sm:$0xff] %v1846_v25 }
 0x51d   : > { %2566 = shalt.err (!%p2563_p4)
}
 0x51e   : > { %s2567_s17 = scalar_lea.hbm %s3392_s13, 1024  ;;  %s2571_s26 = scalar_lea.hbm %s3443_s5, 2048 }
 0x51f   : > { %p2568_p5 = scmp.ne.s32.totalorder %s3392_s13, %s2567_s17  ;;  %p2572_p11 = scmp.lt.s32.totalorder %s3392_s13, %s3443_s5 }
 0x520   : > { %p2573_p12 = scmp.lt.s32.totalorder %s2571_s26, %s2567_s17 }
 0x521   : > { %p2569_p6 = pnand %p2568_p5, %p3501_p1 }
 0x522   : > { %p2574_p0 = por %p2573_p12, %p2572_p11 }
 0x523   : > { %p2570_p10 = pneg %p2569_p6 }
 0x525   : > { %p2575_p9 = pnand %p2574_p0, %p2570_p10 }
 0x527   : > { %2578 = shalt.err (!%p2575_p9)
}
 0x528   : > { %s2631_s10 = smov 128   ;;  %s2632_s9 = smov 8  }
 0x529   : > { %2248 = dma.vmem_to_hbm [thread:$0]  (%p3501_p1), %s3394_s12, 1024, %s3392_s13, %s1856_s14, %s2631_s10, %s2631_s10, %s2632_s9  }
 0x52a PF: > { %s1884_s11 = sand.u32 1, %s2609_s18   ;;  %p3502_p13 = scmp.ne.s32.totalorder %s3448_s30, 0 }
 0x52b   : > { %s1885_s6 = scalar_lea.sflag [#allocation6], %s1884_s11 }
 0x52c   : > { %p2258_p2 = pnand %p1975_p8, %p3502_p13 }
 0x52e   : > { %p2259_p3 = pneg %p2258_p2 }
 0x530   : > { %2604 = dma.done.wait (%p2259_p3), %s1885_s6, 1024  }
 0x531   : > { %2606 = vsyncadd (%p2259_p3), %s1885_s6, 4294966272  ;;  %p17_p7 = scmp.ge.s32.totalorder %s2688_s24, 4   ;;  %s3503_s18 = smov %s2613_s19 }
 0x532   : > { %s3504_s19 = smov %s2617_s20  ;;  %s3505_s20 = smov %s2700_s27 }
 0x533   : > { %s3506_s21 = smov %s2688_s24  ;;  %19 = sbr.rel (!%p17_p7) target bundleno = 5 (0x5), region = 132 }
 0x538   :  { %1890 = vsyncpa [#allocation5], 1 }
 0x539   :  { %1892 = vsyncpa [#allocation5 + $0x1], 1 }
 0x53a   :  { %1893 = vsyncpa [#allocation9], 1 }
 0x53b   :  { %1894 = vsyncpa [#allocation6], 1 }
 0x53c   :  { %1896 = vsyncpa [#allocation6 + $0x1], 1 }

</bundles_post_ra>
